<compile_context>
chip_gen: v5e
topology: v5e:2x2
jax: 0.10.0
libtpu: 0.0.40
codegen_flags: <defaults>
</compile_context>

<pallas_src>
import functools

import jax
import jax.numpy as jnp
from jax.experimental import pallas as pl
from jax.experimental.pallas import tpu as pltpu

# ----------------------------- small config ---------------------------------
VOCAB = 256
HIDDEN = 128
N_HEADS = 4
N_KV_HEADS = 4
HEAD_DIM = HIDDEN // N_HEADS          # 32
INTER = 256
N_LAYERS = 2
EPS = 1e-5
ROPE_THETA = 10000.0
SEQ = 8
DTYPE = jnp.float32
WEIGHT_DTYPE = jnp.bfloat16           # storage / MXU-input dtype for the big weights

Q_SIZE = N_HEADS * HEAD_DIM           # 128
KV_SIZE = N_KV_HEADS * HEAD_DIM       # 128
PROJ_SIZE = Q_SIZE + 2 * KV_SIZE + 2 * INTER   # merged [qkv | gate_up] = 896


# ----------------------------- fused Pallas kernel ---------------------------
def _cohere_model_kernel(h0_ref, lnw_ref, wproj_ref, wo_ref, wdown_ref,
                         cosq_ref, sinq_ref, cosk_ref, sink_ref, flnw_ref,
                         o_ref, res_ref,
                         *, eps, n_heads, n_kv_heads, head_dim, inter, n_layers):
    """Whole CohereModel forward.  Grid axis = decoder layer (weights streamed);
    residual stream resident in VMEM scratch; final LayerNorm fused as epilogue."""
    l = pl.program_id(0)
    q_size = n_heads * head_dim
    kv_size = n_kv_heads * head_dim
    half = head_dim // 2
    rep = n_heads // n_kv_heads

    @pl.when(l == 0)
    def _():
        res_ref[...] = h0_ref[...].astype(jnp.float32)

    x = res_ref[...]                                           # [T, H] residual (f32)
    T = x.shape[0]

    # ---- input LayerNorm (f32 stats, weight, no bias) ----
    mean = jnp.mean(x, axis=-1, keepdims=True)
    var = jnp.mean((x - mean) ** 2, axis=-1, keepdims=True)
    normed = (x - mean) * jax.lax.rsqrt(var + eps) * lnw_ref[0].astype(jnp.float32)

    # ---- merged qkv|gate_up projection: one lane-dense MXU dot, bf16 in / f32 acc ----
    proj = jnp.dot(normed.astype(wproj_ref.dtype), wproj_ref[0],
                   preferred_element_type=jnp.float32)         # [T, PROJ]
    q = proj[:, :q_size]
    k = proj[:, q_size:q_size + kv_size]
    v = proj[:, q_size + kv_size:q_size + 2 * kv_size]
    gate = proj[:, q_size + 2 * kv_size:q_size + 2 * kv_size + inter]
    up = proj[:, q_size + 2 * kv_size + inter:]

    # ---- rotary (GPT-J interleaved, is_neox_style=False).  q/k weight columns were
    # de-interleaved at load time ([all even dims | all odd dims]), so the interleaved
    # pair partner is exactly a roll by half the lane width (self-inverse, so the roll
    # direction convention is irrelevant); the rotation sign lives in the sin table. ----
    q = q * cosq_ref[...] + pltpu.roll(q, q_size // 2, 1) * sinq_ref[...]
    k = k * cosk_ref[...] + pltpu.roll(k, kv_size // 2, 1) * sink_ref[...]
    q = q * (head_dim ** -0.5)                                 # fold attention scale into q

    # ---- causal attention, all heads unrolled; heads concatenated for one o_proj ----
    row = jax.lax.broadcasted_iota(jnp.int32, (T, T), 0)
    col = jax.lax.broadcasted_iota(jnp.int32, (T, T), 1)
    causal = row >= col
    head_outs = []
    for h in range(n_heads):
        hk = h // rep                                          # GQA sharing (rep == 1 here)
        # even-dim / odd-dim halves of this head in the de-interleaved layout
        qe = q[:, h * half:(h + 1) * half]
        qo = q[:, q_size // 2 + h * half:q_size // 2 + (h + 1) * half]
        ke = k[:, hk * half:(hk + 1) * half]
        ko = k[:, kv_size // 2 + hk * half:kv_size // 2 + (hk + 1) * half]
        s = (jnp.dot(qe, ke.T, preferred_element_type=jnp.float32)
             + jnp.dot(qo, ko.T, preferred_element_type=jnp.float32))   # [T, T]
        s = jnp.where(causal, s, -1e30)
        m = jnp.max(s, axis=-1, keepdims=True)
        p = jnp.exp(s - m)
        p = p / jnp.sum(p, axis=-1, keepdims=True)             # exact softmax denominator
        vh = v[:, hk * head_dim:(hk + 1) * head_dim]           # v keeps the original layout
        head_outs.append(jnp.dot(p, vh, preferred_element_type=jnp.float32))
    attn = jnp.concatenate(head_outs, axis=-1)                 # [T, q_size]
    attn_out = jnp.dot(attn.astype(wo_ref.dtype), wo_ref[0],
                       preferred_element_type=jnp.float32)     # single K=128 o_proj dot

    # ---- MLP: SiLU(gate) * up, then down projection ----
    mlp_h = gate * jax.nn.sigmoid(gate) * up
    mlp_out = jnp.dot(mlp_h.astype(wdown_ref.dtype), wdown_ref[0],
                      preferred_element_type=jnp.float32)      # [T, H]

    # ---- Cohere parallel residual: residual + attn + mlp ----
    h_new = x + attn_out + mlp_out
    res_ref[...] = h_new

    # ---- final model LayerNorm fused as the last layer's epilogue ----
    @pl.when(l == n_layers - 1)
    def _():
        fmean = jnp.mean(h_new, axis=-1, keepdims=True)
        fvar = jnp.mean((h_new - fmean) ** 2, axis=-1, keepdims=True)
        y = (h_new - fmean) * jax.lax.rsqrt(fvar + eps) * flnw_ref[...].astype(jnp.float32)
        o_ref[...] = y.astype(o_ref.dtype)


# ----------------------------- JAX glue --------------------------------------
def rope_tables(positions, n_heads, head_dim, theta=ROPE_THETA):
    """cos/sin tables matching the de-interleaved q/k column layout
    ([all even dims | all odd dims]); rotation sign folded into the sin table."""
    inv_freq = 1.0 / (theta ** (jnp.arange(0, head_dim, 2, dtype=jnp.float32) / head_dim))
    freqs = positions.astype(jnp.float32)[:, None] * inv_freq[None, :]   # [T, head_dim/2]
    cos = jnp.tile(jnp.cos(freqs), (1, n_heads))                          # [T, n*head_dim/2]
    sin = jnp.tile(jnp.sin(freqs), (1, n_heads))
    cos_full = jnp.concatenate([cos, cos], axis=1)                        # [T, n*head_dim]
    sin_full = jnp.concatenate([-sin, sin], axis=1)
    return cos_full.astype(jnp.float32), sin_full.astype(jnp.float32)


def _deinterleave_perm(n_heads, head_dim):
    """perm[new_col] = old_col: per head, columns reordered to [even dims | odd dims],
    stacked as [head0_even .. headN_even | head0_odd .. headN_odd]."""
    half = head_dim // 2
    heads = jnp.arange(n_heads, dtype=jnp.int32)[:, None]
    evens = jnp.arange(half, dtype=jnp.int32)[None, :]
    even_cols = (heads * head_dim + 2 * evens).reshape(-1)
    return jnp.concatenate([even_cols, even_cols + 1])


def _snap_bf16(x):
    """Snap f32 weights to bf16-representable values (lossless later bf16 cast)."""
    return x.astype(jnp.bfloat16).astype(jnp.float32)


def init_params(key):
    scale = 0.02
    keys = jax.random.split(key, 1 + 3 * N_LAYERS)
    params = {
        "embed": (jax.random.normal(keys[0], (VOCAB, HIDDEN)) * scale).astype(DTYPE),
        "final_norm": jnp.ones((HIDDEN,), DTYPE),
        "layers": [],
    }
    for l in range(N_LAYERS):
        k0, k1, k2 = keys[1 + 3 * l: 4 + 3 * l]
        params["layers"].append({
            "ln_w": jnp.ones((HIDDEN,), DTYPE),
            # merged [qkv | gate_up] projection: [H, Q + 2*KV + 2*I]
            "w_proj": _snap_bf16(jax.random.normal(k0, (HIDDEN, PROJ_SIZE)) * scale),
            "w_o": _snap_bf16(jax.random.normal(k1, (Q_SIZE, HIDDEN)) * scale),
            "w_down": _snap_bf16(jax.random.normal(k2, (INTER, HIDDEN)) * scale),
        })
    return params


def prepare_kernel_params(params):
    """One-time (load-time) weight prep: stack per-layer weights on a leading 'layer'
    axis for streaming, de-interleave q/k projection columns for the roll-based rotary,
    and store the big matmul weights in bf16."""
    perm_q = _deinterleave_perm(N_HEADS, HEAD_DIM)
    perm_k = _deinterleave_perm(N_KV_HEADS, HEAD_DIM)
    w_proj, w_o, w_down, ln_w = [], [], [], []
    for layer in params["layers"]:
        wp = layer["w_proj"]
        wq = wp[:, :Q_SIZE][:, perm_q]
        wk = wp[:, Q_SIZE:Q_SIZE + KV_SIZE][:, perm_k]
        w_proj.append(jnp.concatenate([wq, wk, wp[:, Q_SIZE + KV_SIZE:]], axis=1))
        w_o.append(layer["w_o"])
        w_down.append(layer["w_down"])
        ln_w.append(layer["ln_w"])
    return {
        "embed": params["embed"],
        "ln_w": jnp.stack(ln_w).reshape(N_LAYERS, 1, HIDDEN).astype(jnp.float32),
        "w_proj": jnp.stack(w_proj).astype(WEIGHT_DTYPE),     # [L, H, PROJ]
        "w_o": jnp.stack(w_o).astype(WEIGHT_DTYPE),           # [L, Q, H]
        "w_down": jnp.stack(w_down).astype(WEIGHT_DTYPE),     # [L, I, H]
        "final_norm": params["final_norm"].reshape(1, HIDDEN).astype(jnp.float32),
    }


def cohere_forward(kparams, input_ids, positions):
    """Embedding gather + ONE fused pallas_call covering all layers + final norm."""
    T = input_ids.shape[0]
    h0 = jnp.take(kparams["embed"], input_ids, axis=0)          # [T, HIDDEN]
    cos_q, sin_q = rope_tables(positions, N_HEADS, HEAD_DIM)
    cos_k, sin_k = rope_tables(positions, N_KV_HEADS, HEAD_DIM)

    kernel = functools.partial(
        _cohere_model_kernel, eps=EPS, n_heads=N_HEADS, n_kv_heads=N_KV_HEADS,
        head_dim=HEAD_DIM, inter=INTER, n_layers=N_LAYERS)

    return pl.pallas_call(
        kernel,
        grid=(N_LAYERS,),
        in_specs=[
            pl.BlockSpec((T, HIDDEN), lambda l: (0, 0)),                 # h0 (used at l==0)
            pl.BlockSpec((1, 1, HIDDEN), lambda l: (l, 0, 0)),           # ln_w  (streamed)
            pl.BlockSpec((1, HIDDEN, PROJ_SIZE), lambda l: (l, 0, 0)),   # w_proj (streamed)
            pl.BlockSpec((1, Q_SIZE, HIDDEN), lambda l: (l, 0, 0)),      # w_o    (streamed)
            pl.BlockSpec((1, INTER, HIDDEN), lambda l: (l, 0, 0)),       # w_down (streamed)
            pl.BlockSpec((T, Q_SIZE), lambda l: (0, 0)),                 # cos_q (fetched once)
            pl.BlockSpec((T, Q_SIZE), lambda l: (0, 0)),                 # sin_q
            pl.BlockSpec((T, KV_SIZE), lambda l: (0, 0)),                # cos_k
            pl.BlockSpec((T, KV_SIZE), lambda l: (0, 0)),                # sin_k
            pl.BlockSpec((1, HIDDEN), lambda l: (0, 0)),                 # final norm weight
        ],
        out_specs=pl.BlockSpec((T, HIDDEN), lambda l: (0, 0)),
        out_shape=jax.ShapeDtypeStruct((T, HIDDEN), DTYPE),
        scratch_shapes=[pltpu.VMEM((T, HIDDEN), jnp.float32)],           # resident residual
        # Layer axis is a sequential carry.  TODO(synk): add a leading 'parallel'
        # token-tile axis (v7x 2-TC sharding) once T is large enough to tile.
        compiler_params=pltpu.CompilerParams(dimension_semantics=("arbitrary",)),
    )(h0, kparams["ln_w"], kparams["w_proj"], kparams["w_o"], kparams["w_down"],
      cos_q, sin_q, cos_k, sin_k, kparams["final_norm"])


# ----------------------------- plain-JAX reference ---------------------------
def _apply_rotary_ref(x, positions, theta=ROPE_THETA):
    d = x.shape[-1]
    inv_freq = 1.0 / (theta ** (jnp.arange(0, d, 2, dtype=jnp.float32) / d))
    freqs = positions[:, None].astype(jnp.float32) * inv_freq[None, :]
    cos = jnp.cos(freqs)[:, None, :]
    sin = jnp.sin(freqs)[:, None, :]
    xf = x.astype(jnp.float32)
    x1 = xf[..., 0::2]
    x2 = xf[..., 1::2]
    o1 = x1 * cos - x2 * sin
    o2 = x2 * cos + x1 * sin
    return jnp.stack([o1, o2], axis=-1).reshape(x.shape).astype(x.dtype)


def _layernorm_ref(x, w, eps=EPS):
    xf = x.astype(jnp.float32)
    mean = xf.mean(-1, keepdims=True)
    var = ((xf - mean) ** 2).mean(-1, keepdims=True)
    return ((xf - mean) * jax.lax.rsqrt(var + eps) * w.astype(jnp.float32)).astype(x.dtype)


def cohere_forward_ref(params, input_ids, positions):
    """Mirrors the PyTorch module op-for-op on the canonical (unstacked) params."""
    T = input_ids.shape[0]
    h = jnp.take(params["embed"], input_ids, axis=0)
    scaling = HEAD_DIM ** -0.5
    rep = N_HEADS // N_KV_HEADS
    for layer in params["layers"]:
        residual = h
        normed = _layernorm_ref(h, layer["ln_w"])
        proj = normed @ layer["w_proj"]
        q = proj[:, :Q_SIZE].reshape(T, N_HEADS, HEAD_DIM)
        k = proj[:, Q_SIZE:Q_SIZE + KV_SIZE].reshape(T, N_KV_HEADS, HEAD_DIM)
        v = proj[:, Q_SIZE + KV_SIZE:Q_SIZE + 2 * KV_SIZE].reshape(T, N_KV_HEADS, HEAD_DIM)
        gate = proj[:, Q_SIZE + 2 * KV_SIZE:Q_SIZE + 2 * KV_SIZE + INTER]
        up = proj[:, Q_SIZE + 2 * KV_SIZE + INTER:]
        q = _apply_rotary_ref(q, positions)
        k = _apply_rotary_ref(k, positions)
        if rep > 1:
            k = jnp.repeat(k, rep, axis=1)
            v = jnp.repeat(v, rep, axis=1)
        s = jnp.einsum("qhd,khd->hqk", q, k) * scaling
        mask = jnp.tril(jnp.ones((T, T), bool))
        s = jnp.where(mask[None], s, -1e30)
        p = jax.nn.softmax(s, axis=-1)
        attn = jnp.einsum("hqk,khd->qhd", p, v).reshape(T, Q_SIZE)
        attn_out = attn @ layer["w_o"]
        mlp_out = (jax.nn.silu(gate) * up) @ layer["w_down"]
        h = residual + attn_out + mlp_out
    return _layernorm_ref(h, params["final_norm"])


# ----------------------------- main ------------------------------------------
if __name__ == "__main__":
    key = jax.random.PRNGKey(0)
    pkey, ikey = jax.random.split(key)
    params = init_params(pkey)
    kparams = prepare_kernel_params(params)   # one-time load-time prep

    input_ids = jax.random.randint(ikey, (SEQ,), 0, VOCAB, dtype=jnp.int32)
    positions = jnp.arange(SEQ, dtype=jnp.int32)
    # TODO(synk): paged KV-cache / decode path not modeled (prefill only).

    fwd = jax.jit(cohere_forward)
    hidden_states = fwd(kparams, input_ids, positions)
    jax.block_until_ready(hidden_states)

    assert hidden_states.shape == (SEQ, HIDDEN)
    assert bool(jnp.all(jnp.isfinite(hidden_states)))

    # correctness check against a plain-JAX f32 reference (same bf16-representable
    # weight values; remaining error is bf16 rounding of matmul activations only)
    with jax.default_matmul_precision("float32"):
        ref = jax.jit(cohere_forward_ref)(params, input_ids, positions)
    jax.block_until_ready(ref)
    max_err = float(jnp.max(jnp.abs(hidden_states - ref)))
    assert max_err < 5e-2, f"mismatch vs reference: max abs err {max_err}"

    print("KERNEL_OK")
</pallas_src>

<mosaic_0001>
module attributes {stable_mosaic.version = 11 : i64} {
  func.func @_cohere_model_kernel(%arg0: i32, %arg1: memref<8x128xf32, #tpu.memory_space<vmem>>, %arg2: memref<1x1x128xf32, #tpu.memory_space<vmem>>, %arg3: memref<1x128x896xbf16, #tpu.memory_space<vmem>>, %arg4: memref<1x128x128xbf16, #tpu.memory_space<vmem>>, %arg5: memref<1x256x128xbf16, #tpu.memory_space<vmem>>, %arg6: memref<8x128xf32, #tpu.memory_space<vmem>>, %arg7: memref<8x128xf32, #tpu.memory_space<vmem>>, %arg8: memref<8x128xf32, #tpu.memory_space<vmem>>, %arg9: memref<8x128xf32, #tpu.memory_space<vmem>>, %arg10: memref<1x128xf32, #tpu.memory_space<vmem>>, %arg11: memref<8x128xf32, #tpu.memory_space<vmem>>, %arg12: memref<8x128xf32, #tpu.memory_space<vmem>>) attributes {dimension_semantics = [#tpu.dimension_semantics<arbitrary>], iteration_bounds = array<i64: 2>, scalar_prefetch = 0 : i64, scratch_operands = 1 : i64, tpu.core_type = #tpu.core_type<tc>, window_params = [{pipeline_mode = #tpu.pipeline_mode<synchronous>, transform_indices = @transform_0, window_bounds = array<i64: 8, 128>}, {transform_indices = @transform_1, window_bounds = array<i64: 1, 1, 128>}, {transform_indices = @transform_2, window_bounds = array<i64: 1, 128, 896>}, {transform_indices = @transform_3, window_bounds = array<i64: 1, 128, 128>}, {transform_indices = @transform_4, window_bounds = array<i64: 1, 256, 128>}, {pipeline_mode = #tpu.pipeline_mode<synchronous>, transform_indices = @transform_5, window_bounds = array<i64: 8, 128>}, {pipeline_mode = #tpu.pipeline_mode<synchronous>, transform_indices = @transform_6, window_bounds = array<i64: 8, 128>}, {pipeline_mode = #tpu.pipeline_mode<synchronous>, transform_indices = @transform_7, window_bounds = array<i64: 8, 128>}, {pipeline_mode = #tpu.pipeline_mode<synchronous>, transform_indices = @transform_8, window_bounds = array<i64: 8, 128>}, {pipeline_mode = #tpu.pipeline_mode<synchronous>, transform_indices = @transform_9, window_bounds = array<i64: 1, 128>}, {pipeline_mode = #tpu.pipeline_mode<synchronous>, transform_indices = @transform_10, window_bounds = array<i64: 8, 128>}]} {
    %c0_i32 = arith.constant 0 : i32
    %0 = arith.cmpi eq, %arg0, %c0_i32 : i32
    %1 = arith.extui %0 : i1 to i32
    %c0_i32_0 = arith.constant 0 : i32
    %2 = arith.cmpi ne, %1, %c0_i32_0 : i32
    scf.if %2 {
      %c0_59 = arith.constant 0 : index
      %c0_60 = arith.constant 0 : index
      %162 = vector.load %arg1[%c0_59, %c0_60] : memref<8x128xf32, #tpu.memory_space<vmem>>, vector<8x128xf32>
      %c0_61 = arith.constant 0 : index
      %c0_62 = arith.constant 0 : index
      %163 = vector.load %arg12[%c0_61, %c0_62] : memref<8x128xf32, #tpu.memory_space<vmem>>, vector<8x128xf32>
      tpu.vector_store %arg12[%c0_61, %c0_62], %162 {strides = array<i32>} : memref<8x128xf32, #tpu.memory_space<vmem>>, vector<8x128xf32>,
    } else {
    }
    %c0 = arith.constant 0 : index
    %c0_1 = arith.constant 0 : index
    %3 = vector.load %arg12[%c0, %c0_1] : memref<8x128xf32, #tpu.memory_space<vmem>>, vector<8x128xf32>
    %cst = arith.constant dense<0.000000e+00> : vector<8xf32>
    %4 = vector.multi_reduction <add>, %3, %cst [1] : vector<8x128xf32> to vector<8xf32>
    %5 = vector.shape_cast %4 : vector<8xf32> to vector<8x1xf32>
    %cst_2 = arith.constant 1.280000e+02 : f32
    %6 = vector.broadcast %cst_2 : f32 to vector<8x1xf32>
    %7 = arith.divf %5, %6 : vector<8x1xf32>
    %8 = vector.broadcast %7 : vector<8x1xf32> to vector<8x128xf32>
    %9 = arith.subf %3, %8 : vector<8x128xf32>
    %10 = arith.mulf %9, %9 : vector<8x128xf32>
    %cst_3 = arith.constant dense<0.000000e+00> : vector<8xf32>
    %11 = vector.multi_reduction <add>, %10, %cst_3 [1] : vector<8x128xf32> to vector<8xf32>
    %12 = vector.shape_cast %11 : vector<8xf32> to vector<8x1xf32>
    %cst_4 = arith.constant 1.280000e+02 : f32
    %13 = vector.broadcast %cst_4 : f32 to vector<8x1xf32>
    %14 = arith.divf %12, %13 : vector<8x1xf32>
    %15 = vector.broadcast %7 : vector<8x1xf32> to vector<8x128xf32>
    %16 = arith.subf %3, %15 : vector<8x128xf32>
    %cst_5 = arith.constant 9.99999974E-6 : f32
    %17 = vector.broadcast %cst_5 : f32 to vector<8x1xf32>
    %18 = arith.addf %14, %17 : vector<8x1xf32>
    %19 = math.rsqrt %18 : vector<8x1xf32>
    %20 = vector.broadcast %19 : vector<8x1xf32> to vector<8x128xf32>
    %21 = arith.mulf %16, %20 : vector<8x128xf32>
    %c0_6 = arith.constant 0 : index
    %c0_7 = arith.constant 0 : index
    %c0_8 = arith.constant 0 : index
    %22 = vector.load %arg2[%c0_6, %c0_7, %c0_8] : memref<1x1x128xf32, #tpu.memory_space<vmem>>, vector<1x1x128xf32>
    %23 = vector.shape_cast %22 : vector<1x1x128xf32> to vector<1x128xf32>
    %24 = vector.broadcast %23 : vector<1x128xf32> to vector<8x128xf32>
    %25 = arith.mulf %21, %24 : vector<8x128xf32>
    %26 = arith.truncf %25 : vector<8x128xf32> to vector<8x128xbf16>
    %c0_9 = arith.constant 0 : index
    %c0_10 = arith.constant 0 : index
    %c0_11 = arith.constant 0 : index
    %27 = vector.load %arg3[%c0_9, %c0_10, %c0_11] : memref<1x128x896xbf16, #tpu.memory_space<vmem>>, vector<1x128x896xbf16>
    %28 = vector.shape_cast %27 : vector<1x128x896xbf16> to vector<128x896xbf16>
    %cst_12 = arith.constant dense<0.000000e+00> : vector<8x896xf32>
    %29 = tpu.matmul %26, %28, %cst_12 {dimension_numbers = #tpu.dot_dimension_numbers<[1], [0], [0], [1], [0, 0, 1, 1], [], []>} : vector<8x128xbf16>, vector<128x896xbf16>, vector<8x896xf32> -> vector<8x896xf32>
    %30 = vector.extract_strided_slice %29 {offsets = [0, 0], sizes = [8, 128], strides = [1, 1]} : vector<8x896xf32> to vector<8x128xf32>
    %31 = vector.extract_strided_slice %29 {offsets = [0, 128], sizes = [8, 128], strides = [1, 1]} : vector<8x896xf32> to vector<8x128xf32>
    %32 = vector.extract_strided_slice %29 {offsets = [0, 256], sizes = [8, 128], strides = [1, 1]} : vector<8x896xf32> to vector<8x128xf32>
    %33 = vector.extract_strided_slice %29 {offsets = [0, 384], sizes = [8, 256], strides = [1, 1]} : vector<8x896xf32> to vector<8x256xf32>
    %34 = vector.extract_strided_slice %29 {offsets = [0, 640], sizes = [8, 256], strides = [1, 1]} : vector<8x896xf32> to vector<8x256xf32>
    %c0_13 = arith.constant 0 : index
    %c0_14 = arith.constant 0 : index
    %35 = vector.load %arg6[%c0_13, %c0_14] : memref<8x128xf32, #tpu.memory_space<vmem>>, vector<8x128xf32>
    %36 = arith.mulf %30, %35 : vector<8x128xf32>
    %c64_i32 = arith.constant 64 : i32
    %37 = tpu.dynamic_rotate %30 by %c64_i32 dim 1 : vector<8x128xf32>, i32 -> vector<8x128xf32>
    %c0_15 = arith.constant 0 : index
    %c0_16 = arith.constant 0 : index
    %38 = vector.load %arg7[%c0_15, %c0_16] : memref<8x128xf32, #tpu.memory_space<vmem>>, vector<8x128xf32>
    %39 = arith.mulf %37, %38 : vector<8x128xf32>
    %40 = arith.addf %36, %39 : vector<8x128xf32>
    %c0_17 = arith.constant 0 : index
    %c0_18 = arith.constant 0 : index
    %41 = vector.load %arg8[%c0_17, %c0_18] : memref<8x128xf32, #tpu.memory_space<vmem>>, vector<8x128xf32>
    %42 = arith.mulf %31, %41 : vector<8x128xf32>
    %c64_i32_19 = arith.constant 64 : i32
    %43 = tpu.dynamic_rotate %31 by %c64_i32_19 dim 1 : vector<8x128xf32>, i32 -> vector<8x128xf32>
    %c0_20 = arith.constant 0 : index
    %c0_21 = arith.constant 0 : index
    %44 = vector.load %arg9[%c0_20, %c0_21] : memref<8x128xf32, #tpu.memory_space<vmem>>, vector<8x128xf32>
    %45 = arith.mulf %43, %44 : vector<8x128xf32>
    %46 = arith.addf %42, %45 : vector<8x128xf32>
    %cst_22 = arith.constant 0.176776692 : f32
    %47 = vector.broadcast %cst_22 : f32 to vector<8x128xf32>
    %48 = arith.mulf %40, %47 : vector<8x128xf32>
    %49 = tpu.iota {dimensions = array<i32: 0>} : vector<8x8xi32>
    %50 = tpu.iota {dimensions = array<i32: 1>} : vector<8x8xi32>
    %51 = arith.cmpi sge, %49, %50 : vector<8x8xi32>
    %52 = vector.extract_strided_slice %48 {offsets = [0, 0], sizes = [8, 16], strides = [1, 1]} : vector<8x128xf32> to vector<8x16xf32>
    %53 = vector.extract_strided_slice %48 {offsets = [0, 64], sizes = [8, 16], strides = [1, 1]} : vector<8x128xf32> to vector<8x16xf32>
    %54 = vector.extract_strided_slice %46 {offsets = [0, 0], sizes = [8, 16], strides = [1, 1]} : vector<8x128xf32> to vector<8x16xf32>
    %55 = vector.extract_strided_slice %46 {offsets = [0, 64], sizes = [8, 16], strides = [1, 1]} : vector<8x128xf32> to vector<8x16xf32>
    %56 = tpu.transpose %54, [1, 0] : vector<8x16xf32> -> vector<16x8xf32>
    %cst_23 = arith.constant dense<0.000000e+00> : vector<8x8xf32>
    %57 = tpu.matmul %52, %56, %cst_23 {dimension_numbers = #tpu.dot_dimension_numbers<[1], [0], [0], [1], [0, 0, 1, 1], [], []>} : vector<8x16xf32>, vector<16x8xf32>, vector<8x8xf32> -> vector<8x8xf32>
    %58 = tpu.transpose %55, [1, 0] : vector<8x16xf32> -> vector<16x8xf32>
    %cst_24 = arith.constant dense<0.000000e+00> : vector<8x8xf32>
    %59 = tpu.matmul %53, %58, %cst_24 {dimension_numbers = #tpu.dot_dimension_numbers<[1], [0], [0], [1], [0, 0, 1, 1], [], []>} : vector<8x16xf32>, vector<16x8xf32>, vector<8x8xf32> -> vector<8x8xf32>
    %60 = arith.addf %57, %59 : vector<8x8xf32>
    %cst_25 = arith.constant -1.000000e+30 : f32
    %61 = vector.broadcast %cst_25 : f32 to vector<8x8xf32>
    %62 = arith.select %51, %60, %61 : vector<8x8xi1>, vector<8x8xf32>
    %cst_26 = arith.constant dense<0xFF800000> : vector<8xf32>
    %63 = vector.multi_reduction <maximumf>, %62, %cst_26 [1] : vector<8x8xf32> to vector<8xf32>
    %64 = vector.shape_cast %63 : vector<8xf32> to vector<8x1xf32>
    %65 = vector.broadcast %64 : vector<8x1xf32> to vector<8x8xf32>
    %66 = arith.subf %62, %65 : vector<8x8xf32>
    %67 = math.exp %66 : vector<8x8xf32>
    %cst_27 = arith.constant dense<0.000000e+00> : vector<8xf32>
    %68 = vector.multi_reduction <add>, %67, %cst_27 [1] : vector<8x8xf32> to vector<8xf32>
    %69 = vector.shape_cast %68 : vector<8xf32> to vector<8x1xf32>
    %70 = vector.broadcast %69 : vector<8x1xf32> to vector<8x8xf32>
    %71 = arith.divf %67, %70 : vector<8x8xf32>
    %72 = vector.extract_strided_slice %32 {offsets = [0, 0], sizes = [8, 32], strides = [1, 1]} : vector<8x128xf32> to vector<8x32xf32>
    %cst_28 = arith.constant dense<0.000000e+00> : vector<8x32xf32>
    %73 = tpu.matmul %71, %72, %cst_28 {dimension_numbers = #tpu.dot_dimension_numbers<[1], [0], [0], [1], [0, 0, 1, 1], [], []>} : vector<8x8xf32>, vector<8x32xf32>, vector<8x32xf32> -> vector<8x32xf32>
    %74 = vector.extract_strided_slice %48 {offsets = [0, 16], sizes = [8, 16], strides = [1, 1]} : vector<8x128xf32> to vector<8x16xf32>
    %75 = vector.extract_strided_slice %48 {offsets = [0, 80], sizes = [8, 16], strides = [1, 1]} : vector<8x128xf32> to vector<8x16xf32>
    %76 = vector.extract_strided_slice %46 {offsets = [0, 16], sizes = [8, 16], strides = [1, 1]} : vector<8x128xf32> to vector<8x16xf32>
    %77 = vector.extract_strided_slice %46 {offsets = [0, 80], sizes = [8, 16], strides = [1, 1]} : vector<8x128xf32> to vector<8x16xf32>
    %78 = tpu.transpose %76, [1, 0] : vector<8x16xf32> -> vector<16x8xf32>
    %cst_29 = arith.constant dense<0.000000e+00> : vector<8x8xf32>
    %79 = tpu.matmul %74, %78, %cst_29 {dimension_numbers = #tpu.dot_dimension_numbers<[1], [0], [0], [1], [0, 0, 1, 1], [], []>} : vector<8x16xf32>, vector<16x8xf32>, vector<8x8xf32> -> vector<8x8xf32>
    %80 = tpu.transpose %77, [1, 0] : vector<8x16xf32> -> vector<16x8xf32>
    %cst_30 = arith.constant dense<0.000000e+00> : vector<8x8xf32>
    %81 = tpu.matmul %75, %80, %cst_30 {dimension_numbers = #tpu.dot_dimension_numbers<[1], [0], [0], [1], [0, 0, 1, 1], [], []>} : vector<8x16xf32>, vector<16x8xf32>, vector<8x8xf32> -> vector<8x8xf32>
    %82 = arith.addf %79, %81 : vector<8x8xf32>
    %cst_31 = arith.constant -1.000000e+30 : f32
    %83 = vector.broadcast %cst_31 : f32 to vector<8x8xf32>
    %84 = arith.select %51, %82, %83 : vector<8x8xi1>, vector<8x8xf32>
    %cst_32 = arith.constant dense<0xFF800000> : vector<8xf32>
    %85 = vector.multi_reduction <maximumf>, %84, %cst_32 [1] : vector<8x8xf32> to vector<8xf32>
    %86 = vector.shape_cast %85 : vector<8xf32> to vector<8x1xf32>
    %87 = vector.broadcast %86 : vector<8x1xf32> to vector<8x8xf32>
    %88 = arith.subf %84, %87 : vector<8x8xf32>
    %89 = math.exp %88 : vector<8x8xf32>
    %cst_33 = arith.constant dense<0.000000e+00> : vector<8xf32>
    %90 = vector.multi_reduction <add>, %89, %cst_33 [1] : vector<8x8xf32> to vector<8xf32>
    %91 = vector.shape_cast %90 : vector<8xf32> to vector<8x1xf32>
    %92 = vector.broadcast %91 : vector<8x1xf32> to vector<8x8xf32>
    %93 = arith.divf %89, %92 : vector<8x8xf32>
    %94 = vector.extract_strided_slice %32 {offsets = [0, 32], sizes = [8, 32], strides = [1, 1]} : vector<8x128xf32> to vector<8x32xf32>
    %cst_34 = arith.constant dense<0.000000e+00> : vector<8x32xf32>
    %95 = tpu.matmul %93, %94, %cst_34 {dimension_numbers = #tpu.dot_dimension_numbers<[1], [0], [0], [1], [0, 0, 1, 1], [], []>} : vector<8x8xf32>, vector<8x32xf32>, vector<8x32xf32> -> vector<8x32xf32>
    %96 = vector.extract_strided_slice %48 {offsets = [0, 32], sizes = [8, 16], strides = [1, 1]} : vector<8x128xf32> to vector<8x16xf32>
    %97 = vector.extract_strided_slice %48 {offsets = [0, 96], sizes = [8, 16], strides = [1, 1]} : vector<8x128xf32> to vector<8x16xf32>
    %98 = vector.extract_strided_slice %46 {offsets = [0, 32], sizes = [8, 16], strides = [1, 1]} : vector<8x128xf32> to vector<8x16xf32>
    %99 = vector.extract_strided_slice %46 {offsets = [0, 96], sizes = [8, 16], strides = [1, 1]} : vector<8x128xf32> to vector<8x16xf32>
    %100 = tpu.transpose %98, [1, 0] : vector<8x16xf32> -> vector<16x8xf32>
    %cst_35 = arith.constant dense<0.000000e+00> : vector<8x8xf32>
    %101 = tpu.matmul %96, %100, %cst_35 {dimension_numbers = #tpu.dot_dimension_numbers<[1], [0], [0], [1], [0, 0, 1, 1], [], []>} : vector<8x16xf32>, vector<16x8xf32>, vector<8x8xf32> -> vector<8x8xf32>
    %102 = tpu.transpose %99, [1, 0] : vector<8x16xf32> -> vector<16x8xf32>
    %cst_36 = arith.constant dense<0.000000e+00> : vector<8x8xf32>
    %103 = tpu.matmul %97, %102, %cst_36 {dimension_numbers = #tpu.dot_dimension_numbers<[1], [0], [0], [1], [0, 0, 1, 1], [], []>} : vector<8x16xf32>, vector<16x8xf32>, vector<8x8xf32> -> vector<8x8xf32>
    %104 = arith.addf %101, %103 : vector<8x8xf32>
    %cst_37 = arith.constant -1.000000e+30 : f32
    %105 = vector.broadcast %cst_37 : f32 to vector<8x8xf32>
    %106 = arith.select %51, %104, %105 : vector<8x8xi1>, vector<8x8xf32>
    %cst_38 = arith.constant dense<0xFF800000> : vector<8xf32>
    %107 = vector.multi_reduction <maximumf>, %106, %cst_38 [1] : vector<8x8xf32> to vector<8xf32>
    %108 = vector.shape_cast %107 : vector<8xf32> to vector<8x1xf32>
    %109 = vector.broadcast %108 : vector<8x1xf32> to vector<8x8xf32>
    %110 = arith.subf %106, %109 : vector<8x8xf32>
    %111 = math.exp %110 : vector<8x8xf32>
    %cst_39 = arith.constant dense<0.000000e+00> : vector<8xf32>
    %112 = vector.multi_reduction <add>, %111, %cst_39 [1] : vector<8x8xf32> to vector<8xf32>
    %113 = vector.shape_cast %112 : vector<8xf32> to vector<8x1xf32>
    %114 = vector.broadcast %113 : vector<8x1xf32> to vector<8x8xf32>
    %115 = arith.divf %111, %114 : vector<8x8xf32>
    %116 = vector.extract_strided_slice %32 {offsets = [0, 64], sizes = [8, 32], strides = [1, 1]} : vector<8x128xf32> to vector<8x32xf32>
    %cst_40 = arith.constant dense<0.000000e+00> : vector<8x32xf32>
    %117 = tpu.matmul %115, %116, %cst_40 {dimension_numbers = #tpu.dot_dimension_numbers<[1], [0], [0], [1], [0, 0, 1, 1], [], []>} : vector<8x8xf32>, vector<8x32xf32>, vector<8x32xf32> -> vector<8x32xf32>
    %118 = vector.extract_strided_slice %48 {offsets = [0, 48], sizes = [8, 16], strides = [1, 1]} : vector<8x128xf32> to vector<8x16xf32>
    %119 = vector.extract_strided_slice %48 {offsets = [0, 112], sizes = [8, 16], strides = [1, 1]} : vector<8x128xf32> to vector<8x16xf32>
    %120 = vector.extract_strided_slice %46 {offsets = [0, 48], sizes = [8, 16], strides = [1, 1]} : vector<8x128xf32> to vector<8x16xf32>
    %121 = vector.extract_strided_slice %46 {offsets = [0, 112], sizes = [8, 16], strides = [1, 1]} : vector<8x128xf32> to vector<8x16xf32>
    %122 = tpu.transpose %120, [1, 0] : vector<8x16xf32> -> vector<16x8xf32>
    %cst_41 = arith.constant dense<0.000000e+00> : vector<8x8xf32>
    %123 = tpu.matmul %118, %122, %cst_41 {dimension_numbers = #tpu.dot_dimension_numbers<[1], [0], [0], [1], [0, 0, 1, 1], [], []>} : vector<8x16xf32>, vector<16x8xf32>, vector<8x8xf32> -> vector<8x8xf32>
    %124 = tpu.transpose %121, [1, 0] : vector<8x16xf32> -> vector<16x8xf32>
    %cst_42 = arith.constant dense<0.000000e+00> : vector<8x8xf32>
    %125 = tpu.matmul %119, %124, %cst_42 {dimension_numbers = #tpu.dot_dimension_numbers<[1], [0], [0], [1], [0, 0, 1, 1], [], []>} : vector<8x16xf32>, vector<16x8xf32>, vector<8x8xf32> -> vector<8x8xf32>
    %126 = arith.addf %123, %125 : vector<8x8xf32>
    %cst_43 = arith.constant -1.000000e+30 : f32
    %127 = vector.broadcast %cst_43 : f32 to vector<8x8xf32>
    %128 = arith.select %51, %126, %127 : vector<8x8xi1>, vector<8x8xf32>
    %cst_44 = arith.constant dense<0xFF800000> : vector<8xf32>
    %129 = vector.multi_reduction <maximumf>, %128, %cst_44 [1] : vector<8x8xf32> to vector<8xf32>
    %130 = vector.shape_cast %129 : vector<8xf32> to vector<8x1xf32>
    %131 = vector.broadcast %130 : vector<8x1xf32> to vector<8x8xf32>
    %132 = arith.subf %128, %131 : vector<8x8xf32>
    %133 = math.exp %132 : vector<8x8xf32>
    %cst_45 = arith.constant dense<0.000000e+00> : vector<8xf32>
    %134 = vector.multi_reduction <add>, %133, %cst_45 [1] : vector<8x8xf32> to vector<8xf32>
    %135 = vector.shape_cast %134 : vector<8xf32> to vector<8x1xf32>
    %136 = vector.broadcast %135 : vector<8x1xf32> to vector<8x8xf32>
    %137 = arith.divf %133, %136 : vector<8x8xf32>
    %138 = vector.extract_strided_slice %32 {offsets = [0, 96], sizes = [8, 32], strides = [1, 1]} : vector<8x128xf32> to vector<8x32xf32>
    %cst_46 = arith.constant dense<0.000000e+00> : vector<8x32xf32>
    %139 = tpu.matmul %137, %138, %cst_46 {dimension_numbers = #tpu.dot_dimension_numbers<[1], [0], [0], [1], [0, 0, 1, 1], [], []>} : vector<8x8xf32>, vector<8x32xf32>, vector<8x32xf32> -> vector<8x32xf32>
    %140 = tpu.concatenate %73, %95, %117, %139 in 1 : vector<8x32xf32>, vector<8x32xf32>, vector<8x32xf32>, vector<8x32xf32> -> vector<8x128xf32>
    %141 = arith.truncf %140 : vector<8x128xf32> to vector<8x128xbf16>
    %c0_47 = arith.constant 0 : index
    %c0_48 = arith.constant 0 : index
    %c0_49 = arith.constant 0 : index
    %142 = vector.load %arg4[%c0_47, %c0_48, %c0_49] : memref<1x128x128xbf16, #tpu.memory_space<vmem>>, vector<1x128x128xbf16>
    %143 = vector.shape_cast %142 : vector<1x128x128xbf16> to vector<128x128xbf16>
    %cst_50 = arith.constant dense<0.000000e+00> : vector<8x128xf32>
    %144 = tpu.matmul %141, %143, %cst_50 {dimension_numbers = #tpu.dot_dimension_numbers<[1], [0], [0], [1], [0, 0, 1, 1], [], []>} : vector<8x128xbf16>, vector<128x128xbf16>, vector<8x128xf32> -> vector<8x128xf32>
    %145 = arith.negf %33 : vector<8x256xf32>
    %146 = math.exp %145 : vector<8x256xf32>
    %cst_51 = arith.constant 1.000000e+00 : f32
    %147 = vector.broadcast %cst_51 : f32 to vector<8x256xf32>
    %148 = arith.addf %147, %146 : vector<8x256xf32>
    %149 = arith.divf %147, %148 : vector<8x256xf32>
    %150 = arith.mulf %33, %149 : vector<8x256xf32>
    %151 = arith.mulf %150, %34 : vector<8x256xf32>
    %152 = arith.truncf %151 : vector<8x256xf32> to vector<8x256xbf16>
    %c0_52 = arith.constant 0 : index
    %c0_53 = arith.constant 0 : index
    %c0_54 = arith.constant 0 : index
    %153 = vector.load %arg5[%c0_52, %c0_53, %c0_54] : memref<1x256x128xbf16, #tpu.memory_space<vmem>>, vector<1x256x128xbf16>
    %154 = vector.shape_cast %153 : vector<1x256x128xbf16> to vector<256x128xbf16>
    %cst_55 = arith.constant dense<0.000000e+00> : vector<8x128xf32>
    %155 = tpu.matmul %152, %154, %cst_55 {dimension_numbers = #tpu.dot_dimension_numbers<[1], [0], [0], [1], [0, 0, 1, 1], [], []>} : vector<8x256xbf16>, vector<256x128xbf16>, vector<8x128xf32> -> vector<8x128xf32>
    %156 = arith.addf %3, %144 : vector<8x128xf32>
    %157 = arith.addf %156, %155 : vector<8x128xf32>
    %c0_56 = arith.constant 0 : index
    %c0_57 = arith.constant 0 : index
    %158 = vector.load %arg12[%c0_56, %c0_57] : memref<8x128xf32, #tpu.memory_space<vmem>>, vector<8x128xf32>
    tpu.vector_store %arg12[%c0_56, %c0_57], %157 {strides = array<i32>} : memref<8x128xf32, #tpu.memory_space<vmem>>, vector<8x128xf32>,
    %c1_i32 = arith.constant 1 : i32
    %159 = arith.cmpi eq, %arg0, %c1_i32 : i32
    %160 = arith.extui %159 : i1 to i32
    %c0_i32_58 = arith.constant 0 : i32
    %161 = arith.cmpi ne, %160, %c0_i32_58 : i32
    scf.if %161 {
      %cst_59 = arith.constant dense<0.000000e+00> : vector<8xf32>
      %162 = vector.multi_reduction <add>, %157, %cst_59 [1] : vector<8x128xf32> to vector<8xf32>
      %163 = vector.shape_cast %162 : vector<8xf32> to vector<8x1xf32>
      %cst_60 = arith.constant 1.280000e+02 : f32
      %164 = vector.broadcast %cst_60 : f32 to vector<8x1xf32>
      %165 = arith.divf %163, %164 : vector<8x1xf32>
      %166 = vector.broadcast %165 : vector<8x1xf32> to vector<8x128xf32>
      %167 = arith.subf %157, %166 : vector<8x128xf32>
      %168 = arith.mulf %167, %167 : vector<8x128xf32>
      %cst_61 = arith.constant dense<0.000000e+00> : vector<8xf32>
      %169 = vector.multi_reduction <add>, %168, %cst_61 [1] : vector<8x128xf32> to vector<8xf32>
      %170 = vector.shape_cast %169 : vector<8xf32> to vector<8x1xf32>
      %cst_62 = arith.constant 1.280000e+02 : f32
      %171 = vector.broadcast %cst_62 : f32 to vector<8x1xf32>
      %172 = arith.divf %170, %171 : vector<8x1xf32>
      %173 = vector.broadcast %165 : vector<8x1xf32> to vector<8x128xf32>
      %174 = arith.subf %157, %173 : vector<8x128xf32>
      %cst_63 = arith.constant 9.99999974E-6 : f32
      %175 = vector.broadcast %cst_63 : f32 to vector<8x1xf32>
      %176 = arith.addf %172, %175 : vector<8x1xf32>
      %177 = math.rsqrt %176 : vector<8x1xf32>
      %178 = vector.broadcast %177 : vector<8x1xf32> to vector<8x128xf32>
      %179 = arith.mulf %174, %178 : vector<8x128xf32>
      %c0_64 = arith.constant 0 : index
      %c0_65 = arith.constant 0 : index
      %180 = vector.load %arg10[%c0_64, %c0_65] : memref<1x128xf32, #tpu.memory_space<vmem>>, vector<1x128xf32>
      %181 = vector.broadcast %180 : vector<1x128xf32> to vector<8x128xf32>
      %182 = arith.mulf %179, %181 : vector<8x128xf32>
      %c0_66 = arith.constant 0 : index
      %c0_67 = arith.constant 0 : index
      %183 = vector.load %arg11[%c0_66, %c0_67] : memref<8x128xf32, #tpu.memory_space<vmem>>, vector<8x128xf32>
      tpu.vector_store %arg11[%c0_66, %c0_67], %182 {strides = array<i32>} : memref<8x128xf32, #tpu.memory_space<vmem>>, vector<8x128xf32>,
    } else {
    }
    return
  }
  func.func @transform_0(%arg0: i32) -> (i32, i32) {
    %c0_i32 = arith.constant 0 : i32
    %c0_i32_0 = arith.constant 0 : i32
    %c0_i32_1 = arith.constant 0 : i32
    return %c0_i32, %c0_i32_0 : i32, i32
  }
  func.func @transform_1(%arg0: i32) -> (i32, i32, i32) {
    %c0_i32 = arith.constant 0 : i32
    %c0_i32_0 = arith.constant 0 : i32
    %c0_i32_1 = arith.constant 0 : i32
    return %arg0, %c0_i32, %c0_i32_0 : i32, i32, i32
  }
  func.func @transform_2(%arg0: i32) -> (i32, i32, i32) {
    %c0_i32 = arith.constant 0 : i32
    %c0_i32_0 = arith.constant 0 : i32
    %c0_i32_1 = arith.constant 0 : i32
    return %arg0, %c0_i32, %c0_i32_0 : i32, i32, i32
  }
  func.func @transform_3(%arg0: i32) -> (i32, i32, i32) {
    %c0_i32 = arith.constant 0 : i32
    %c0_i32_0 = arith.constant 0 : i32
    %c0_i32_1 = arith.constant 0 : i32
    return %arg0, %c0_i32, %c0_i32_0 : i32, i32, i32
  }
  func.func @transform_4(%arg0: i32) -> (i32, i32, i32) {
    %c0_i32 = arith.constant 0 : i32
    %c0_i32_0 = arith.constant 0 : i32
    %c0_i32_1 = arith.constant 0 : i32
    return %arg0, %c0_i32, %c0_i32_0 : i32, i32, i32
  }
  func.func @transform_5(%arg0: i32) -> (i32, i32) {
    %c0_i32 = arith.constant 0 : i32
    %c0_i32_0 = arith.constant 0 : i32
    %c0_i32_1 = arith.constant 0 : i32
    return %c0_i32, %c0_i32_0 : i32, i32
  }
  func.func @transform_6(%arg0: i32) -> (i32, i32) {
    %c0_i32 = arith.constant 0 : i32
    %c0_i32_0 = arith.constant 0 : i32
    %c0_i32_1 = arith.constant 0 : i32
    return %c0_i32, %c0_i32_0 : i32, i32
  }
  func.func @transform_7(%arg0: i32) -> (i32, i32) {
    %c0_i32 = arith.constant 0 : i32
    %c0_i32_0 = arith.constant 0 : i32
    %c0_i32_1 = arith.constant 0 : i32
    return %c0_i32, %c0_i32_0 : i32, i32
  }
  func.func @transform_8(%arg0: i32) -> (i32, i32) {
    %c0_i32 = arith.constant 0 : i32
    %c0_i32_0 = arith.constant 0 : i32
    %c0_i32_1 = arith.constant 0 : i32
    return %c0_i32, %c0_i32_0 : i32, i32
  }
  func.func @transform_9(%arg0: i32) -> (i32, i32) {
    %c0_i32 = arith.constant 0 : i32
    %c0_i32_0 = arith.constant 0 : i32
    %c0_i32_1 = arith.constant 0 : i32
    return %c0_i32, %c0_i32_0 : i32, i32
  }
  func.func @transform_10(%arg0: i32) -> (i32, i32) {
    %c0_i32 = arith.constant 0 : i32
    %c0_i32_0 = arith.constant 0 : i32
    %c0_i32_1 = arith.constant 0 : i32
    return %c0_i32, %c0_i32_0 : i32, i32
  }
}

</mosaic_0001>

<bundles_post_ra>
// kernel: neg.2
= control target key start
LH: loop header
LB: loop body
LE: loop exit
PB: predicated region body
PF: predicated region fallthrough
CT: control target
= control target key end

     0   :  { %s24_s0 = inlined_call_operand.vmem [shape: f32[8,64], index: 0, kind: input, shape index: {}]   ;;  %s25_s1 = inlined_call_operand.vmem [shape: f32[8,64], index: 1, kind: output, shape index: {}]  }
   0x1   :  { %v2_v0 = vld [vmem:[%s24_s0] sm:$0xff] }
   0x2   :  { %v5_v1 = vxor.u32 2147483648, %v2_v0 }
   0x4   :  { %7 = vst [vmem:[%s25_s1] sm:$0xff] %v5_v1 }

// kernel: tile.29
= control target key start
LH: loop header
LB: loop body
LE: loop exit
PB: predicated region body
PF: predicated region fallthrough
CT: control target
= control target key end

     0   :  { %vm36_vm0 = vcmask 1047556   ;;  %s81_s22 = smov 16   ;;  %s82_s23 = smov 32   ;;  %vm38_vm1 = vcmask 130048   ;;  %vm48_vm2 = vcmask 523648   ;;  %vm58_vm3 = vcmask 392448   ;;  %s133_s0 = inlined_call_operand.vmem [shape: f32[8,4,16], index: 0, kind: input, shape index: {}]   ;;  %s134_s1 = inlined_call_operand.vmem [shape: f32[8,64], index: 1, kind: output, shape index: {}]  }
   0x1   :  { %v70_v0 = vld [vmem:[%s133_s0 + $0x1c] sm:$0xf]  ;;  %v71_v1 = vld [vmem:[%s133_s0 + $0x18] sm:$0xf]  ;;  %v72_v2 = vld [vmem:[%s133_s0 + $0x14] sm:$0xf] }
   0x2   :  { %7 = vst [vmem:[#allocation0 + $0x38] sm:$0xf] %v70_v0  ;;  %v73_v3 = vld [vmem:[%s133_s0 + $0x10] sm:$0xf]  ;;  %v74_v4 = vld [vmem:[%s133_s0 + $0xc] sm:$0xf] }
   0x3   :  { %11 = vst [vmem:[#allocation0 + $0x30] sm:$0xf] %v71_v1  ;;  %v75_v5 = vld [vmem:[%s133_s0 + $0x8] sm:$0xf]  ;;  %v76_v6 = vld [vmem:[%s133_s0 + $0x4] sm:$0xf] }
   0x4   :  { %15 = vst [vmem:[#allocation0 + $0x28] sm:$0xf] %v72_v2  ;;  %v32_v7 = vld [vmem:[%s133_s0] sm:$0xf]  ;;  %s80_s0 = smov 48   ;;  %vm68_vm4 = vcmask 261248  }
   0x5   :  { %19 = vst [vmem:[#allocation0 + $0x20] sm:$0xf] %v73_v3 }
   0x6   :  { %23 = vst [vmem:[#allocation0 + $0x18] sm:$0xf] %v74_v4 }
   0x7   :  { %27 = vst [vmem:[#allocation0 + $0x10] sm:$0xf] %v75_v5 }
   0x8   :  { %31 = vst [vmem:[#allocation0 + $0x8] sm:$0xf] %v76_v6 }
   0x9   :  { %33 = vst [vmem:[#allocation0] sm:$0xf] %v32_v7 }
   0xc   :  { %v43_v8 = vld [vmem:[#allocation0 + $0x3] ss:$8 sm:$0xf0]   ;;  %v63_v9 = vld [vmem:[#allocation0 + $0x1] ss:$8 sm:$0xf0]  }
   0xd   :  { %v53_v15 = vld [vmem:[#allocation0 + $0x2] ss:$8 sm:$0xf0]   ;;  %v35_v18 = vld [vmem:[#allocation0] ss:$8 sm:$0xf0]  }
  0x10   :  { %v41_v10 = vld [vmem:[#allocation0 + $0x3] ss:$8 sm:$0xf]   ;;  %v61_v12 = vld [vmem:[#allocation0 + $0x1] ss:$8 sm:$0xf]  }
  0x11   :  { %v45_v11 = vsel %vm36_vm0, %v43_v8, %v41_v10  ;;  %v65_v13 = vsel %vm36_vm0, %v63_v9, %v61_v12  ;;  %v51_v14 = vld [vmem:[#allocation0 + $0x2] ss:$8 sm:$0xf]   ;;  %v34_v17 = vld [vmem:[#allocation0] ss:$8 sm:$0xf]  }
  0x12   :  { %46 = vrot.lane.b32.xlu0 %v45_v11, %s80_s0  ;;  %66 = vrot.lane.b32.xlu1 %v65_v13, %s81_s22  ;;  %v55_v16 = vsel %vm36_vm0, %v53_v15, %v51_v14  ;;  %v37_v19 = vsel %vm36_vm0, %v35_v18, %v34_v17 }
  0x13   :  { %39 = vst.msk [vmem:[%s134_s1] sm:$0xff] %vm38_vm1, %v37_v19  }
  0x1a   :  { %56 = vrot.lane.b32.xlu0 %v55_v16, %s82_s23 }
  0x84   :  { %v47_v20 = vpop.permute.xlu0 %46   ;;  %v67_v21 = vpop.permute.xlu1 %66  }
  0x85   :  { %49 = vst.msk [vmem:[%s134_s1] sm:$0xff] %vm48_vm2, %v47_v20  }
  0x8c   :  { %v57_v22 = vpop.permute.xlu0 %56  }
  0x8d   :  { %59 = vst.msk [vmem:[%s134_s1] sm:$0xff] %vm58_vm3, %v57_v22  }
  0x8e   :  { %69 = vst.msk [vmem:[%s134_s1] sm:$0xff] %vm68_vm4, %v67_v21  }

// kernel: cohere_forward.1
= control target key start
LH: loop header
LB: loop body
LE: loop exit
PB: predicated region body
PF: predicated region fallthrough
CT: control target
= control target key end

     0   :  { %s2964_s0 = inlined_call_operand.vmem [shape: f32[8,128], index: 0, kind: input, shape index: {}]   ;;  %s2965_s1 = inlined_call_operand.vmem [shape: f32[2,1,128], index: 1, kind: input, shape index: {}]   ;;  %s2966_s2 = inlined_call_operand.hbm [shape: bf16[2,128,896], index: 2, kind: input, shape index: {}]   ;;  %s2967_s3 = inlined_call_operand.vmem [shape: bf16[2,128,128], index: 3, kind: input, shape index: {}]   ;;  %s2968_s4 = inlined_call_operand.hbm [shape: bf16[2,256,128], index: 4, kind: input, shape index: {}]   ;;  %s2969_s5 = inlined_call_operand.vmem [shape: f32[8,128], index: 5, kind: input, shape index: {}, may-alias: {5,7}]   ;;  %s2970_s6 = inlined_call_operand.vmem [shape: f32[8,128], index: 6, kind: input, shape index: {}, may-alias: {6,8}]   ;;  %s2971_s7 = inlined_call_operand.vmem [shape: f32[8,128], index: 7, kind: input, shape index: {}, may-alias: {5,7}]   ;;  %s2972_s8 = inlined_call_operand.vmem [shape: f32[8,128], index: 8, kind: input, shape index: {}, may-alias: {6,8}]   ;;  %s2973_s9 = inlined_call_operand.vmem [shape: f32[1,128], index: 9, kind: input, shape index: {}]   ;;  %s2974_s10 = inlined_call_operand.hbm [shape: f32[8,128], index: 10, kind: output, shape index: {}]  }
   0x1   :  { %2978 = sst [smem:[#allocation15_spill]] %s2966_s2 }
   0x2   :  { %15 = vsyncpa [#allocation4], 0 }
   0x3   :  { %17 = vsyncpa [#allocation4 + $0x1], 0 }
   0x4   :  { %18 = vsyncpa [#allocation7], 0 }
   0x5   :  { %20 = vsyncpa [#allocation7 + $0x1], 0 }
   0x6   :  { %21 = vsyncpa [#allocation5], 0  ;;  %s2543_s13 = smov 0   ;;  %s2545_s14 = smov 0  }
   0x7   :  { %s2547_s15 = smov 0   ;;  %s2549_s16 = smov 0  }
   0x8 LB: > { %2979 = sst [smem:[#allocation12_spill]] %s2469_s15  ;;  %s2562_s17 = sadd.s32 4294967295, %s2473_s16   ;;  %s2473_s16 = sphi %s2549_s16, %s2986_s16   ;;  %s2469_s15 = sphi %s2547_s15, %s2988_s15   ;;  %s2465_s14 = sphi %s2545_s14, %s2990_s14   ;;  %s2461_s13 = sphi %s2543_s13, %s2989_s13  }
   0x9   : > { %s2565_s18 = sadd.s32 1, %s2473_s16   ;;  %s81_s20 = sadd.s32 1, %s2469_s15 }
   0xa   : > { %2980 = sst [smem:[#allocation13_spill]] %s2565_s18  ;;  %s78_s19 = ssub.s32 %s2473_s16, %s2565_s18 }
   0xb   : > { %p79_p0 = scmp.eq.s32.totalorder %s78_s19, 0  ;;  %p88_p1 = scmp.ne.s32.totalorder %s2469_s15, %s2465_s14 }
   0xc   : > { %p89_p2 = scmp.eq.s32.totalorder %s2473_s16, 0  ;;  %p94_p3 = scmp.ne.s32.totalorder %s2465_s14, %s2461_s13 }
   0xd   : > { %s2575_s21 = scalar_select %p79_p0, %s2469_s15, %s81_s20  }
   0xe   : > { %p90_p4 = por %p89_p2, %p88_p1  ;;  %p95_p5 = scmp.eq.s32.totalorder %s2562_s17, 0 }
   0xf   : > { %2981 = sst [smem:[#allocation14_spill]] %s2575_s21  ;;  %p2262_p6 = scmp.lt.s32.totalorder %s2473_s16, 2 }
  0x10   : > { %p2579_p7 = por %p95_p5, %p94_p3  ;;  %s2584_s23 = sand.u32 1, %s2469_s15  }
  0x11   : > { %s2244_s24 = smul.u32 448, %s2584_s23  ;;  %p2588_p8 = pnand %p2262_p6, %p90_p4 }
  0x12   : > { %s2245_s25 = smul.u32 448, %s2473_s16  ;;  %s2984_s2 = sld [smem:[#allocation15_spill]] }
  0x13   : > { %s324_s30 = scalar_lea.vmem [#allocation3], %s2244_s24  ;;  %p1810_p9 = scmp.ge.s32.totalorder %s2473_s16, 1 }
  0x14   : > { %s332_s11 = sshll.u32 %s324_s30, 4  ;;  %s321_s13 = scalar_lea.sflag [#allocation4], %s2584_s23  ;;  %s333_s11 = int_to_ptr.vmem [resolvable:$true] %s332_s11 }
  0x15   : > { %p2347_p11 = pneg %p2588_p8 }
  0x18   : > { %s329_s29 = scalar_lea.hbm %s2984_s2, %s2245_s25  ;;  %s2350_s24 = scalar_lea.hbm %s2984_s2, 896 }
  0x19   : > { %s330_s12 = sshll.u32 %s329_s29, 4  ;;  %s331_s12 = int_to_ptr.hbm [resolvable:$true] %s330_s12 }
  0x1a   : > { %s2343_s19 = sshra.s32 %s331_s12, 4  ;;  %s2344_s19 = int_to_ptr.hbm [resolvable:$true] %s2343_s19 }
  0x1b   : > { %s2345_s20 = scalar_lea.hbm %s2344_s19, 448  ;;  %p2351_p0 = scmp.lt.s32.totalorder %s2344_s19, %s2984_s2 }
  0x1c   : > { %p2346_p10 = scmp.ne.s32.totalorder %s2344_s19, %s2345_s20  ;;  %p2352_p1 = scmp.lt.s32.totalorder %s2350_s24, %s2345_s20 }
  0x1e   : > { %p2348_p12 = pnand %p2347_p11, %p2346_p10  ;;  %p2353_p2 = por %p2352_p1, %p2351_p0 }
  0x20   : > { %p2349_p13 = pneg %p2348_p12 }
  0x22   : > { %p2354_p3 = pnand %p2353_p2, %p2349_p13 }
  0x24   : > { %2357 = shalt.err (!%p2354_p3)
}
  0x25   : > { %s2475_s30 = smov 448   ;;  %s2476_s21 = smov 28  }
  0x26   : > { %2258 = dma.hbm_to_vmem [thread:$0]  (!%p2588_p8), %s331_s12, 7168, %s333_s11, %s321_s13, %s2475_s30, %s2475_s30, %s2476_s21  }
  0x27   : > { %p370_p4 = scmp.lt.s32.totalorder %s2473_s16, 3  ;;  %s1807_s27 = sshll.u32 %s2584_s23, 7 }
  0x28   : > { %s2162_s28 = sshll.u32 %s2473_s16, 7  ;;  %s354_s29 = scalar_lea.vmem [#allocation6], %s1807_s27 }
  0x29   : > { %p2615_p5 = pnand %p1810_p9, %p370_p4  ;;  %s359_s25 = scalar_lea.hbm %s2968_s4, %s2162_s28 }
  0x2a   : > { %s362_s2 = sshll.u32 %s354_s29, 4  ;;  %s360_s15 = sshll.u32 %s359_s25, 4  ;;  %s363_s2 = int_to_ptr.vmem [resolvable:$true] %s362_s2  ;;  %s361_s15 = int_to_ptr.hbm [resolvable:$true] %s360_s15 }
  0x2b   : > { %s351_s18 = scalar_lea.sflag [#allocation7], %s2584_s23  ;;  %s2373_s21 = sshra.s32 %s361_s15, 4  ;;  %s2374_s21 = int_to_ptr.hbm [resolvable:$true] %s2373_s21 }
  0x2c   : > { %s2375_s11 = scalar_lea.hbm %s2374_s21, 128  ;;  %s2380_s13 = scalar_lea.hbm %s2968_s4, 256 }
  0x2d   : > { %p2376_p6 = scmp.ne.s32.totalorder %s2374_s21, %s2375_s11  ;;  %p2381_p12 = scmp.lt.s32.totalorder %s2374_s21, %s2968_s4 }
  0x2e   : > { %p2382_p13 = scmp.lt.s32.totalorder %s2380_s13, %s2375_s11 }
  0x2f   : > { %p2378_p9 = pnand %p2376_p6, %p2347_p11 }
  0x30   : > { %p2383_p0 = por %p2382_p13, %p2381_p12 }
  0x31   : > { %p2379_p10 = pneg %p2378_p9 }
  0x33   : > { %p2384_p1 = pnand %p2383_p0, %p2379_p10 }
  0x35   : > { %2387 = shalt.err (!%p2384_p1)
}
  0x36   : > { %s2477_s23 = smov 64   ;;  %s2478_s27 = smov 4  }
  0x37   : > { %2261 = dma.hbm_to_vmem [thread:$0]  (!%p2588_p8), %s361_s15, 2048, %s363_s2, %s351_s18, %s2477_s23, %s2477_s23, %s2478_s27  }
  0x38   : > { %374 = sbr.rel (%p2615_p5) target bundleno = 2558 (0x9fe), region = 60  ;;  %s376_s20 = sand.u32 (!%p2615_p5), 1, %s2465_s14  }
  0x39   : > { %s2246_s24 = smul.u32 (!%p2615_p5), 448, %s376_s20  ;;  %s377_s25 = scalar_lea.sflag (!%p2615_p5), [#allocation4], %s376_s20 }
  0x3b   : > { %s2637_s29 = scalar_lea.vmem (!%p2615_p5), [#allocation3], %s2246_s24 }
  0x3d   : > { %2448 = dma.done.wait (%p2579_p7), %s377_s25, 7168  }
  0x3e   : > { %2450 = vsyncadd (%p2579_p7), %s377_s25, 4294960128  ;;  %s1811_s21 = sshll.u32 %s376_s20, 7  ;;  %s387_s11 = scalar_lea.sflag [#allocation7], %s376_s20 }
  0x3f   : > { %s2643_s26 = scalar_lea.vmem [#allocation6], %s1811_s21 }
  0x40   : > { %2452 = dma.done.wait (%p2579_p7), %s387_s11, 2048  }
  0x41   : > { %2454 = vsyncadd (%p2579_p7), %s387_s11, 4294965248  ;;  %p436_p8 = scmp.lt.s32.totalorder %s2562_s17, 1  ;;  %p1814_p11 = scmp.ne.s32.totalorder %s2562_s17, 0 }
  0x43   : > { %s2651_s2 = scalar_select %p436_p8, %s2562_s17, 1 }
  0x44   : > { %447 = sbr.rel (%p1814_p11) target bundleno = 75 (0x4b), region = 72 }
  0x45   : > { %s438_s19 = scalar_lea.vmem %s2965_s1, %s2651_s2  ;;  %s2163_s16 = sshll.u32 %s2651_s2, 6 }
  0x46   : > { %s2661_s30 = scalar_lea.vmem %s2967_s3, %s2163_s16 }
  0x49   : > { %v448_v0 = vld [vmem:[%s2964_s0] sm:$0xff] }
  0x4a   : > { %449 = vst [vmem:[#allocation2] sm:$0xff] %v448_v0 }
  0x4b PF: > { %v2479_v2 = vmov 128.0   ;;  %v2013_v3 = vld [vmem:[%s2637_s29 + $0x188] sm:$0xf]  ;;  %v2216_v4 = vld [vmem:[%s2637_s29 + $0x1a0] sm:$0xf0]  ;;  %s2480_s20 = smov 64  }
  0x4c   : > { %2311 = vrcp.f32 %v2479_v2  ;;  %v2213_v5 = vld [vmem:[%s2637_s29 + $0x18c] sm:$0xf]  ;;  %v2014_v6 = vor.u32 %v2216_v4, %v2013_v3  ;;  %v2015_v7 = vld [vmem:[%s2637_s29 + $0x1a4] sm:$0xf0]  ;;  %v2021_v8 = vld [vmem:[%s2637_s29 + $0x190] sm:$0xf] }
  0x4d   : > { %v2217_v9 = vld [vmem:[%s2637_s29 + $0x1a8] sm:$0xf0]  ;;  %v2018_v10 = vor.u32 %v2213_v5, %v2015_v7  ;;  %v1985_v12 = vld [vmem:[%s2637_s29 + $0x150] sm:$0xf]  ;;  %v2206_v14 = vld [vmem:[%s2637_s29 + $0x154] sm:$0xf] }
  0x4e   : > { %v2022_v11 = vor.u32 %v2217_v9, %v2021_v8  ;;  %v2209_v13 = vld [vmem:[%s2637_s29 + $0x168] sm:$0xf0]  ;;  %836 = vmatpush.bf16.msra.mxu3 %v2014_v6  ;;  %v1987_v16 = vld [vmem:[%s2637_s29 + $0x16c] sm:$0xf0]  ;;  %v1993_v17 = vld [vmem:[%s2637_s29 + $0x158] sm:$0xf] }
  0x4f   : > { %v1986_v15 = vor.u32 %v2209_v13, %v1985_v12  ;;  %v2210_v18 = vld [vmem:[%s2637_s29 + $0x170] sm:$0xf0]  ;;  %849 = vmatpush.bf16.msra.mxu1 %v2018_v10  ;;  %v1990_v20 = vor.u32 %v2206_v14, %v1987_v16  ;;  %v1957_v22 = vld [vmem:[%s2637_s29 + $0x118] sm:$0xf]  ;;  %v2199_v24 = vld [vmem:[%s2637_s29 + $0x11c] sm:$0xf] }
  0x50   : > { %862 = vmatpush.bf16.msra.mxu2 %v2022_v11  ;;  %v1994_v21 = vor.u32 %v2210_v18, %v1993_v17  ;;  %v2202_v23 = vld [vmem:[%s2637_s29 + $0x130] sm:$0xf0]  ;;  %v1959_v25 = vld [vmem:[%s2637_s29 + $0x134] sm:$0xf0]  ;;  %v1965_v26 = vld [vmem:[%s2637_s29 + $0x120] sm:$0xf] }
  0x51   : > { %v2667_v1 = vld [vmem:[#allocation2] sm:$0xff]  ;;  %v1958_v29 = vor.u32 %v2202_v23, %v1957_v22  ;;  %v1929_v30 = vld [vmem:[%s2637_s29 + $0xe0] sm:$0xf]  ;;  %v1962_v32 = vor.u32 %v2199_v24, %v1959_v25  ;;  %v2192_v34 = vld [vmem:[%s2637_s29 + $0xe4] sm:$0xf]  ;;  %s2482_s16 = smov 112  }
  0x52   : > { %451 = vadd.xlane.f32.xlu0 %v2667_v1  ;;  %v2312_v19 = vpop.eup %2311  ;;  %v2203_v27 = vld [vmem:[%s2637_s29 + $0x138] sm:$0xf0]  ;;  %837 = vmatpush.bf16.msra.mxu3 %v1986_v15  ;;  %v2029_v35 = vld [vmem:[%s2637_s29 + $0x198] sm:$0xf]  ;;  %v2218_v36 = vld [vmem:[%s2637_s29 + $0x1b0] sm:$0xf0] }
  0x53   : > { %v454_v28 = vmul.f32 128.0, %v2312_v19  ;;  %v2195_v31 = vld [vmem:[%s2637_s29 + $0xf8] sm:$0xf0]  ;;  %850 = vmatpush.bf16.msra.mxu1 %v1990_v20  ;;  %v1966_v33 = vor.u32 %v2203_v27, %v1965_v26  ;;  %v1931_v37 = vld [vmem:[%s2637_s29 + $0xfc] sm:$0xf0]  ;;  %v2030_v40 = vor.u32 %v2218_v36, %v2029_v35  ;;  %vm458_vm0 = vweird.f32 %v2312_v19  ;;  %s2483_s12 = smov 96  }
  0x54   : > { %863 = vmatpush.bf16.msra.mxu2 %v1994_v21  ;;  %v1937_v38 = vld [vmem:[%s2637_s29 + $0xe8] sm:$0xf]  ;;  %v2196_v39 = vld [vmem:[%s2637_s29 + $0x100] sm:$0xf0]  ;;  %v1930_v42 = vor.u32 %v2195_v31, %v1929_v30  ;;  %v1934_v43 = vor.u32 %v2192_v34, %v1931_v37  ;;  %v2185_v54 = vld [vmem:[%s2637_s29 + $0xac] sm:$0xf] }
  0x55   : > { %v455_v41 = vsub.f32 1.0, %v454_v28  ;;  %888 = vmatpush.bf16.msra.mxu0 %v2030_v40  ;;  %v1938_v44 = vor.u32 %v2196_v39, %v1937_v38  ;;  %v1901_v52 = vld [vmem:[%s2637_s29 + $0xa8] sm:$0xf]  ;;  %v2188_v53 = vld [vmem:[%s2637_s29 + $0xc0] sm:$0xf0]  ;;  %vm953_vm12 = vcmask 130048  }
  0x56   : > { %838 = vmatpush.bf16.msra.mxu3 %v1958_v29  ;;  %v1902_v55 = vor.u32 %v2188_v53, %v1901_v52  ;;  %v1903_v56 = vld [vmem:[%s2637_s29 + $0xc4] sm:$0xf0]  ;;  %v1909_v57 = vld [vmem:[%s2637_s29 + $0xb0] sm:$0xf]  ;;  %v2189_v58 = vld [vmem:[%s2637_s29 + $0xc8] sm:$0xf0] }
  0x57   : > { %851 = vmatpush.bf16.msra.mxu1 %v1962_v32  ;;  %v456_v45 = vmul.f32 %v2312_v19, %v455_v41  ;;  %v1906_v59 = vor.u32 %v2185_v54, %v1903_v56  ;;  %v1910_v60 = vor.u32 %v2189_v58, %v1909_v57  ;;  %v2001_v61 = vld [vmem:[%s2637_s29 + $0x160] sm:$0xf]  ;;  %v2211_v62 = vld [vmem:[%s2637_s29 + $0x178] sm:$0xf0]  ;;  %v1873_v0 = vld [vmem:[%s2637_s29 + $0x70] sm:$0xf] }
  0x58   : > { %864 = vmatpush.bf16.msra.mxu2 %v1966_v33  ;;  %v2002_v63 = vor.u32 %v2211_v62, %v2001_v61  ;;  %v2178_v2 = vld [vmem:[%s2637_s29 + $0x74] sm:$0xf]  ;;  %v1875_v4 = vld [vmem:[%s2637_s29 + $0x8c] sm:$0xf0]  ;;  %v1881_v5 = vld [vmem:[%s2637_s29 + $0x78] sm:$0xf] }
  0x59   : > { %v457_v46 = vadd.f32 %v2312_v19, %v456_v45  ;;  %v2182_v6 = vld [vmem:[%s2637_s29 + $0x90] sm:$0xf0]  ;;  %v1878_v7 = vor.u32 %v2178_v2, %v1875_v4  ;;  %v1973_v9 = vld [vmem:[%s2637_s29 + $0x128] sm:$0xf]  ;;  %v2204_v10 = vld [vmem:[%s2637_s29 + $0x140] sm:$0xf0] }
  0x5a   : > { %839 = vmatpush.bf16.msra.mxu3 %v1930_v42  ;;  %889 = vmatpush.bf16.msra.mxu0 %v2002_v63  ;;  %v1882_v8 = vor.u32 %v2182_v6, %v1881_v5  ;;  %v1974_v11 = vor.u32 %v2204_v10, %v1973_v9  ;;  %v1845_v12 = vld [vmem:[%s2637_s29 + $0x38] sm:$0xf]  ;;  %v2174_v13 = vld [vmem:[%s2637_s29 + $0x50] sm:$0xf0]  ;;  %v2171_v14 = vld [vmem:[%s2637_s29 + $0x3c] sm:$0xf] }
  0x5b   : > { %852 = vmatpush.bf16.msra.mxu1 %v1934_v43  ;;  %v2696_v47 = vsel %vm458_vm0, %v2312_v19, %v457_v46  ;;  %v1846_v15 = vor.u32 %v2174_v13, %v1845_v12  ;;  %v1847_v16 = vld [vmem:[%s2637_s29 + $0x54] sm:$0xf0]  ;;  %v1853_v17 = vld [vmem:[%s2637_s29 + $0x40] sm:$0xf]  ;;  %v2175_v18 = vld [vmem:[%s2637_s29 + $0x58] sm:$0xf0] }
  0x5c   : > { %865 = vmatpush.bf16.msra.mxu2 %v1938_v44  ;;  %v1850_v19 = vor.u32 %v2171_v14, %v1847_v16  ;;  %v1854_v20 = vor.u32 %v2175_v18, %v1853_v17  ;;  %v1945_v21 = vld [vmem:[%s2637_s29 + $0xf0] sm:$0xf]  ;;  %v2197_v22 = vld [vmem:[%s2637_s29 + $0x108] sm:$0xf0]  ;;  %v1817_v24 = vld [vmem:[%s2637_s29] sm:$0xf] }
  0x5d   : > { %v1946_v23 = vor.u32 %v2197_v22, %v1945_v21  ;;  %v2167_v25 = vld [vmem:[%s2637_s29 + $0x18] sm:$0xf0]  ;;  %v2164_v26 = vld [vmem:[%s2637_s29 + $0x4] sm:$0xf]  ;;  %v1819_v28 = vld [vmem:[%s2637_s29 + $0x1c] sm:$0xf0] }
  0x5e   : > { %840 = vmatpush.bf16.msra.mxu3 %v1902_v55  ;;  %890 = vmatpush.bf16.msra.mxu0 %v1974_v11  ;;  %v1818_v27 = vor.u32 %v2167_v25, %v1817_v24  ;;  %v1825_v29 = vld [vmem:[%s2637_s29 + $0x8] sm:$0xf]  ;;  %v2168_v30 = vld [vmem:[%s2637_s29 + $0x20] sm:$0xf0]  ;;  %v1822_v31 = vor.u32 %v2164_v26, %v1819_v28  ;;  %v2214_v33 = vld [vmem:[%s2637_s29 + $0x194] sm:$0xf] }
  0x5f   : > { %853 = vmatpush.bf16.msra.mxu1 %v1906_v59  ;;  %v1826_v32 = vor.u32 %v2168_v30, %v1825_v29  ;;  %v2023_v34 = vld [vmem:[%s2637_s29 + $0x1ac] sm:$0xf0]  ;;  %v1917_v35 = vld [vmem:[%s2637_s29 + $0xb8] sm:$0xf]  ;;  %v2190_v37 = vld [vmem:[%s2637_s29 + $0xd0] sm:$0xf0] }
  0x60   : > { %866 = vmatpush.bf16.msra.mxu2 %v1910_v60  ;;  %v2026_v36 = vor.u32 %v2214_v33, %v2023_v34  ;;  %v2215_v38 = vld [vmem:[%s2637_s29 + $0x19c] sm:$0xf]  ;;  %v2031_v39 = vld [vmem:[%s2637_s29 + $0x1b4] sm:$0xf0]  ;;  %v1918_v40 = vor.u32 %v2190_v37, %v1917_v35  ;;  %v2037_v42 = vld [vmem:[%s2637_s29 + $0x1a0] sm:$0xf] }
  0x61   : > { %v2034_v41 = vor.u32 %v2215_v38, %v2031_v39  ;;  %v2219_v43 = vld [vmem:[%s2637_s29 + $0x1b8] sm:$0xf0]  ;;  %v1995_v46 = vld [vmem:[%s2637_s29 + $0x174] sm:$0xf0]  ;;  %v2208_v52 = vld [vmem:[%s2637_s29 + $0x164] sm:$0xf] }
  0x62   : > { %891 = vmatpush.bf16.msra.mxu0 %v1946_v23  ;;  %v2038_v44 = vor.u32 %v2219_v43, %v2037_v42  ;;  %v2207_v45 = vld [vmem:[%s2637_s29 + $0x15c] sm:$0xf]  ;;  %v2003_v53 = vld [vmem:[%s2637_s29 + $0x17c] sm:$0xf0]  ;;  %v2009_v56 = vld [vmem:[%s2637_s29 + $0x168] sm:$0xf] }
  0x63   : > { %854 = vmatpush.bf16.msra.mxu1 %v1878_v7  ;;  %v2006_v55 = vor.u32 %v2208_v52, %v2003_v53  ;;  %v2212_v57 = vld [vmem:[%s2637_s29 + $0x180] sm:$0xf0]  ;;  %v1967_v60 = vld [vmem:[%s2637_s29 + $0x13c] sm:$0xf0]  ;;  %v1861_v61 = vld [vmem:[%s2637_s29 + $0x48] sm:$0xf] }
  0x64   : > { %867 = vmatpush.bf16.msra.mxu2 %v1882_v8  ;;  %v2010_v58 = vor.u32 %v2212_v57, %v2009_v56  ;;  %v2200_v59 = vld [vmem:[%s2637_s29 + $0x124] sm:$0xf]  ;;  %v1981_v4 = vld [vmem:[%s2637_s29 + $0x130] sm:$0xf]  ;;  %v2205_v5 = vld [vmem:[%s2637_s29 + $0x148] sm:$0xf0] }
  0x65   : > { %v1970_v62 = vor.u32 %v2200_v59, %v1967_v60  ;;  %v2176_v63 = vld [vmem:[%s2637_s29 + $0x60] sm:$0xf0]  ;;  %v1982_v6 = vor.u32 %v2205_v5, %v1981_v4  ;;  %v2193_v7 = vld [vmem:[%s2637_s29 + $0xec] sm:$0xf]  ;;  %v1939_v8 = vld [vmem:[%s2637_s29 + $0x104] sm:$0xf0] }
  0x66   : > { %892 = vmatpush.bf16.msra.mxu0 %v1918_v40  ;;  %v1862_v2 = vor.u32 %v2176_v63, %v1861_v61  ;;  %v1833_v9 = vld [vmem:[%s2637_s29 + $0x10] sm:$0xf]  ;;  %v1942_v10 = vor.u32 %v2193_v7, %v1939_v8  ;;  %v2169_v11 = vld [vmem:[%s2637_s29 + $0x28] sm:$0xf0]  ;;  %v2194_v12 = vld [vmem:[%s2637_s29 + $0xf4] sm:$0xf] }
  0x67   : > { %855 = vmatpush.bf16.msra.mxu1 %v1850_v19  ;;  %v1947_v13 = vld [vmem:[%s2637_s29 + $0x10c] sm:$0xf0]  ;;  %v1834_v14 = vor.u32 %v2169_v11, %v1833_v9  ;;  %v1953_v16 = vld [vmem:[%s2637_s29 + $0xf8] sm:$0xf]  ;;  %v2198_v17 = vld [vmem:[%s2637_s29 + $0x110] sm:$0xf0] }
  0x68   : > { %868 = vmatpush.bf16.msra.mxu2 %v1854_v20  ;;  %v1954_v18 = vor.u32 %v2198_v17, %v1953_v16  ;;  %v2186_v19 = vld [vmem:[%s2637_s29 + $0xb4] sm:$0xf]  ;;  %v1911_v20 = vld [vmem:[%s2637_s29 + $0xcc] sm:$0xf0]  ;;  %v2187_v21 = vld [vmem:[%s2637_s29 + $0xbc] sm:$0xf] }
  0x69   : > { %v1914_v22 = vor.u32 %v2186_v19, %v1911_v20  ;;  %v1919_v23 = vld [vmem:[%s2637_s29 + $0xd4] sm:$0xf0]  ;;  %v1925_v24 = vld [vmem:[%s2637_s29 + $0xc0] sm:$0xf]  ;;  %v2191_v25 = vld [vmem:[%s2637_s29 + $0xd8] sm:$0xf0] }
  0x6a   : > { %v1922_v26 = vor.u32 %v2187_v21, %v1919_v23  ;;  %v2179_v28 = vld [vmem:[%s2637_s29 + $0x7c] sm:$0xf]  ;;  %v1883_v29 = vld [vmem:[%s2637_s29 + $0x94] sm:$0xf0]  ;;  %v2180_v30 = vld [vmem:[%s2637_s29 + $0x84] sm:$0xf] }
  0x6b   : > { %856 = vmatpush.bf16.msra.mxu1 %v1822_v31  ;;  %v1886_v31 = vor.u32 %v2179_v28, %v1883_v29  ;;  %v1897_v33 = vld [vmem:[%s2637_s29 + $0x88] sm:$0xf]  ;;  %v2184_v34 = vld [vmem:[%s2637_s29 + $0xa0] sm:$0xf0]  ;;  %v1855_v38 = vld [vmem:[%s2637_s29 + $0x5c] sm:$0xf0] }
  0x6c   : > { %869 = vmatpush.bf16.msra.mxu2 %v1826_v32  ;;  %v1891_v32 = vld [vmem:[%s2637_s29 + $0x9c] sm:$0xf0]  ;;  %v2172_v37 = vld [vmem:[%s2637_s29 + $0x44] sm:$0xf]  ;;  %v1898_v40 = vor.u32 %v2184_v34, %v1897_v33  ;;  %v1863_v42 = vld [vmem:[%s2637_s29 + $0x64] sm:$0xf0] }
  0x6d   : > { %v1869_v43 = vld [vmem:[%s2637_s29 + $0x50] sm:$0xf]  ;;  %v2166_v53 = vld [vmem:[%s2637_s29 + $0x14] sm:$0xf]  ;;  %vm1003_vm14 = vcmask 64512   ;;  %s2484_s13 = smov 80  }
  0x6e   : > { %v2170_v56 = vld [vmem:[%s2637_s29 + $0x30] sm:$0xf0]  ;;  %s2485_s22 = smov 16   ;;  %s2486_s28 = smov 32  }
  0x6f   : > { %901 = vmatpush.bf16.msrb.mxu1 %v2034_v41  ;;  %v2173_v41 = vld [vmem:[%s2637_s29 + $0x4c] sm:$0xf]  ;;  %p2157_p7 = scmp.ne.s32.totalorder %s2562_s17, 1 }
  0x70   : > { %914 = vmatpush.bf16.msrb.mxu2 %v2038_v44  ;;  %v2177_v44 = vld [vmem:[%s2637_s29 + $0x68] sm:$0xf0] }
  0x71   : > { %v1870_v52 = vor.u32 %v2177_v44, %v1869_v43 }
  0x73   : > { %902 = vmatpush.bf16.msrb.mxu1 %v2006_v55  ;;  %v1841_v55 = vld [vmem:[%s2637_s29 + $0x18] sm:$0xf] }
  0x74   : > { %915 = vmatpush.bf16.msrb.mxu2 %v2010_v58  ;;  %v1842_v59 = vor.u32 %v2170_v56, %v1841_v55 }
  0x78   : > { %916 = vmatpush.bf16.msrb.mxu2 %v1982_v6 }
  0x7c   : > { %917 = vmatpush.bf16.msrb.mxu2 %v1954_v18 }
  0xc5   : > { %v452_v48 = vpop.xlane.xlu0 %451 }
  0xc6   : > { %v460_v49 = vmul.f32 %v2696_v47, %v452_v48  ;;  %v1889_v48 = vld [vmem:[%s2637_s29 + $0x80] sm:$0xf] }
  0xc8   : > { %v2700_v50 = vsub.f32 %v2667_v1, %v460_v49  ;;  %v2181_v1 = vld [vmem:[%s2637_s29 + $0x88] sm:$0xf0]  ;;  %v1998_v49 = vor.u32 %v2207_v45, %v1995_v46  ;;  %v1858_v46 = vor.u32 %v2172_v37, %v1855_v38 }
  0xc9   : > { %v1874_v3 = vor.u32 %v2181_v1, %v1873_v0  ;;  %v2201_v0 = vld [vmem:[%s2637_s29 + $0x12c] sm:$0xf]  ;;  %v1975_v1 = vld [vmem:[%s2637_s29 + $0x144] sm:$0xf0] }
  0xca   : > { %v462_v51 = vmul.f32 %v2700_v50, %v2700_v50 }
  0xcb   : > { %841 = vmatpush.bf16.msra.mxu3 %v1874_v3  ;;  %v1978_v3 = vor.u32 %v2201_v0, %v1975_v1 }
  0xcc   : > { %463 = vadd.xlane.f32.xlu0 %v462_v51  ;;  %v2183_v51 = vld [vmem:[%s2637_s29 + $0x98] sm:$0xf0] }
  0xcd   : > { %v1890_v54 = vor.u32 %v2183_v51, %v1889_v48  ;;  %903 = vmatpush.bf16.msrb.mxu1 %v1978_v3  ;;  %v1866_v48 = vor.u32 %v2173_v41, %v1863_v42  ;;  %v1827_v51 = vld [vmem:[%s2637_s29 + $0x24] sm:$0xf0] }
  0xcf   : > { %842 = vmatpush.bf16.msra.mxu3 %v1846_v15  ;;  %893 = vmatpush.bf16.msra.mxu0 %v1890_v54  ;;  %v1950_v15 = vor.u32 %v2194_v12, %v1947_v13  ;;  %v1835_v54 = vld [vmem:[%s2637_s29 + $0x2c] sm:$0xf0] }
  0xd0   : > { %v1838_v58 = vor.u32 %v2166_v53, %v1835_v54  ;;  %v938_v53 = vld [vmem:[%s2972_s8] sm:$0xff] }
  0xd1   : > { %904 = vmatpush.bf16.msrb.mxu1 %v1950_v15 }
  0xd3   : > { %843 = vmatpush.bf16.msra.mxu3 %v1818_v27  ;;  %894 = vmatpush.bf16.msra.mxu0 %v1862_v2  ;;  %v1926_v27 = vor.u32 %v2191_v25, %v1925_v24  ;;  %v2310_v2 = vld [vmem:[%s438_s19] ss:$0 sm:$0xff]  ;;  %s2481_s19 = smov 48  }
  0xd5   : > { %905 = vmatpush.bf16.msrb.mxu1 %v1922_v26  ;;  %918 = vmatpush.bf16.msrb.mxu2 %v1926_v27 }
  0xd7   : > { %875 = vmatpush.bf16.msrb.mxu3 %v2026_v36  ;;  %895 = vmatpush.bf16.msra.mxu0 %v1834_v14  ;;  %v1894_v36 = vor.u32 %v2180_v30, %v1891_v32 }
  0xd9   : > { %906 = vmatpush.bf16.msrb.mxu1 %v1894_v36  ;;  %919 = vmatpush.bf16.msrb.mxu2 %v1898_v40 }
  0xdb   : > { %876 = vmatpush.bf16.msrb.mxu3 %v1998_v49  ;;  %v2165_v49 = vld [vmem:[%s2637_s29 + $0xc] sm:$0xf] }
  0xdc   : > { %v1830_v57 = vor.u32 %v2165_v49, %v1827_v51 }
  0xdd   : > { %907 = vmatpush.bf16.msrb.mxu1 %v1866_v48  ;;  %920 = vmatpush.bf16.msrb.mxu2 %v1870_v52  ;;  %v934_v52 = vld [vmem:[%s2971_s7] sm:$0xff] }
  0xdf   : > { %877 = vmatpush.bf16.msrb.mxu3 %v1970_v62 }
  0xe1   : > { %908 = vmatpush.bf16.msrb.mxu1 %v1838_v58  ;;  %921 = vmatpush.bf16.msrb.mxu2 %v1842_v59  ;;  %v927_v58 = vld [vmem:[%s2969_s5] sm:$0xff] }
  0xe2   : > { %v931_v59 = vld [vmem:[%s2970_s6] sm:$0xff] }
  0xe3   : > { %878 = vmatpush.bf16.msrb.mxu3 %v1942_v10 }
  0xe7   : > { %879 = vmatpush.bf16.msrb.mxu3 %v1914_v22 }
  0xeb   : > { %880 = vmatpush.bf16.msrb.mxu3 %v1886_v31 }
  0xef   : > { %881 = vmatpush.bf16.msrb.mxu3 %v1858_v46 }
  0xf3   : > { %882 = vmatpush.bf16.msrb.mxu3 %v1830_v57 }
 0x13f   : > { %v464_v35 = vpop.xlane.xlu0 %463 }
 0x140   : > { %v465_v39 = vmul.f32 %v464_v35, %v2696_v47 }
 0x142   : > { %v466_v45 = vadd.f32 1e-05, %v465_v39 }
 0x144   : > { %2313 = vrsqrt.f32 %v466_v45  ;;  %vm473_vm2 = vweird.f32 %v466_v45 }
 0x14a   : > { %v2314_v60 = vpop.eup %2313 }
 0x14b   : > { %v468_v61 = vmul.f32 %v2314_v60, %v466_v45  ;;  %vm474_vm1 = vweird.f32 %v2314_v60 }
 0x14c   : > { %vm475_vm3 = vmor %vm473_vm2, %vm474_vm1 }
 0x14d   : > { %v469_v62 = vmul.f32 %v2314_v60, %v468_v61 }
 0x14f   : > { %v470_v63 = vmul.f32 0.5, %v469_v62 }
 0x151   : > { %v471_v0 = vsub.f32 1.5, %v470_v63 }
 0x153   : > { %v472_v1 = vmul.f32 %v2314_v60, %v471_v0 }
 0x155   : > { %v476_v3 = vsel %vm475_vm3, %v2314_v60, %v472_v1 }
 0x156   : > { %v477_v4 = vmul.f32 %v476_v3, %v2700_v50 }
 0x158   : > { %v482_v5 = vmul.f32 %v2310_v2, %v477_v4 }
 0x15a   : > { %v483_v6 = vpack.c.bf16 %v482_v5, %v482_v5 }
 0x15c   : > { %844 = vmatmul.bf16.vlgmr.msra.gmra.mxu3 %v483_v6  ;;  %857 = vmatmul.bf16.vlgmr.msra.gmra.mxu1 %v483_v6 }
 0x15d   : > { %870 = vmatmul.bf16.vlgmr.msra.gmra.mxu2 %v483_v6  ;;  %896 = vmatmul.bf16.vlgmr.msra.gmra.mxu0 %v483_v6 }
 0x16c   : > { %883 = vmatmul.bf16.vlgmr.msrb.gmra.mxu3 %v483_v6  ;;  %909 = vmatmul.bf16.vlgmr.msrb.gmra.mxu1 %v483_v6 }
 0x16d   : > { %922 = vmatmul.bf16.vlgmr.msrb.gmra.mxu2 %v483_v6 }
 0x1d9   : > { %v858_v7 = vpop.f32.mrf.mxu1 }
 0x1da   : > { %v897_v8 = vpop.f32.mrf.mxu0  ;;  %936 = vrot.lane.b32.xlu1 %v858_v7, %s2480_s20  ;;  %v935_v55 = vmul.f32 %v934_v52, %v858_v7  ;;  %v942_v7 = vlaneseq  ;;  %v2240_v52 = vld [vmem:[%s2643_s26 + $0x60] sm:$0xff] }
 0x1db   : > { %v2092_v9 = vmul.f32 -1.442695, %v897_v8 }
 0x1dd   : > { %2315 = vpow2.f32 %v2092_v9  ;;  %v2844_v9 = vand.u32 127, %v942_v7 }
 0x1df   : > { %v2798_v10 = vpop.f32.mrf.mxu3 }
 0x1e0   : > { %v2800_v11 = vpop.f32.mrf.mxu2  ;;  %v928_v61 = vmul.f32 %v927_v58, %v2798_v10  ;;  %v2231_v58 = vld [vmem:[%s2643_s26 + $0x18] sm:$0xff] }
 0x1e1   : > { %v860_v50 = vpop.f32.mrf.mxu1 }
 0x1e2   : > { %v899_v12 = vpop.f32.mrf.mxu0  ;;  %929 = vrot.lane.b32.xlu1 %v2798_v10, %s2480_s20 }
 0x1e3   : > { %v2316_v13 = vpop.eup %2315 }
 0x1e4   : > { %v1476_v14 = vadd.f32 1.0, %v2316_v13 }
 0x1e6   : > { %2317 = vrcp.f32 %v1476_v14  ;;  %v1503_v22 = vand.u32 2147483648, %v1476_v14  ;;  %v1501_v26 = vand.u32 2147483647, %v1476_v14  ;;  %vm1497_vm5 = vweird.f32 %v1476_v14 }
 0x1e7   : > { %v847_v15 = vpop.f32.mrf.mxu3 }
 0x1e8   : > { %v873_v16 = vpop.f32.mrf.mxu2  ;;  %v1504_v29 = vor.u32 1.1754944e-38, %v1503_v22  ;;  %vm1502_vm7 = vcmp.eq.f32.partialorder %v1501_v26, 8.507059e+37 }
 0x1e9   : > { %v910_v17 = vpop.f32.mrf.mxu1 }
 0x1ec   : > { %v2318_v18 = vpop.eup %2317 }
 0x1ed   : > { %v1493_v19 = vmul.f32 %v2318_v18, %v1476_v14  ;;  %vm1498_vm4 = vweird.f32 %v2318_v18 }
 0x1ee   : > { %vm1499_vm6 = vmor %vm1497_vm5, %vm1498_vm4 }
 0x1ef   : > { %v1494_v20 = vsub.f32 1.0, %v1493_v19  ;;  %v884_v21 = vpop.f32.mrf.mxu3 }
 0x1f0   : > { %v2091_v23 = vmul.f32 -1.442695, %v884_v21  ;;  %v923_v24 = vpop.f32.mrf.mxu2 }
 0x1f1   : > { %v1495_v25 = vmul.f32 %v2318_v18, %v1494_v20  ;;  %v912_v27 = vpop.f32.mrf.mxu1 }
 0x1f2   : > { %2319 = vpow2.f32 %v2091_v23 }
 0x1f3   : > { %v1496_v28 = vadd.f32 %v2318_v18, %v1495_v25 }
 0x1f5   : > { %v1500_v30 = vsel %vm1499_vm6, %v2318_v18, %v1496_v28 }
 0x1f6   : > { %v1505_v31 = vsel %vm1502_vm7, %v1504_v29, %v1500_v30 }
 0x1f7   : > { %v1508_v32 = vmul.f32 %v1505_v31, %v897_v8  ;;  %v886_v33 = vpop.f32.mrf.mxu3  ;;  %v2842_v8 = vshrl.u32 %v942_v7, 7 }
 0x1f8   : > { %v2320_v34 = vpop.eup %2319  ;;  %v925_v35 = vpop.f32.mrf.mxu2 }
 0x1f9   : > { %v1475_v36 = vadd.f32 1.0, %v2320_v34  ;;  %v2804_v37 = vmul.f32 %v1508_v32, %v923_v24  ;;  %vm946_vm13 = vcmp.ge.s32.totalorder %v2842_v8, %v2844_v9 }
 0x1fb   : > { %2321 = vrcp.f32 %v1475_v36  ;;  %v1488_v41 = vand.u32 2147483648, %v1475_v36  ;;  %v1486_v43 = vand.u32 2147483647, %v1475_v36  ;;  %vm1482_vm9 = vweird.f32 %v1475_v36 }
 0x1fd   : > { %v1489_v45 = vor.u32 1.1754944e-38, %v1488_v41  ;;  %vm1487_vm11 = vcmp.eq.f32.partialorder %v1486_v43, 8.507059e+37 }
 0x201   : > { %v2322_v38 = vpop.eup %2321 }
 0x202   : > { %v1478_v39 = vmul.f32 %v2322_v38, %v1475_v36  ;;  %vm1483_vm8 = vweird.f32 %v2322_v38 }
 0x203   : > { %vm1484_vm10 = vmor %vm1482_vm9, %vm1483_vm8 }
 0x204   : > { %v1479_v40 = vsub.f32 1.0, %v1478_v39 }
 0x206   : > { %v1480_v42 = vmul.f32 %v2322_v38, %v1479_v40 }
 0x208   : > { %v1481_v44 = vadd.f32 %v2322_v38, %v1480_v42 }
 0x20a   : > { %v1485_v46 = vsel %vm1484_vm10, %v2322_v38, %v1481_v44  ;;  %v2243_v44 = vld [vmem:[%s2643_s26 + $0x78] sm:$0xff] }
 0x20b   : > { %v1490_v48 = vsel %vm1487_vm11, %v1489_v45, %v1485_v46  ;;  %v2235_v45 = vld [vmem:[%s2643_s26 + $0x38] sm:$0xff]  ;;  %v2242_v46 = vld [vmem:[%s2643_s26 + $0x70] sm:$0xff] }
 0x20c   : > { %v1507_v49 = vmul.f32 %v1490_v48, %v884_v21  ;;  %v2234_v48 = vld [vmem:[%s2643_s26 + $0x30] sm:$0xff] }
 0x20e   : > { %v2806_v51 = vmul.f32 %v1507_v49, %v910_v17  ;;  %v2241_v49 = vld [vmem:[%s2643_s26 + $0x68] sm:$0xff] }
 0x24c   : > { %v937_v54 = vpop.permute.xlu1 %936 }
 0x24d   : > { %v939_v56 = vmul.f32 %v938_v53, %v937_v54  ;;  %v2233_v53 = vld [vmem:[%s2643_s26 + $0x28] sm:$0xff]  ;;  %v2239_v54 = vld [vmem:[%s2643_s26 + $0x58] sm:$0xff] }
 0x24f   : > { %v2814_v57 = vadd.f32 %v939_v56, %v935_v55  ;;  %v2232_v55 = vld [vmem:[%s2643_s26 + $0x20] sm:$0xff]  ;;  %v2238_v56 = vld [vmem:[%s2643_s26 + $0x50] sm:$0xff] }
 0x251   : > { %951 = vrot.lane.b32.xlu2 %v2814_v57, %s2480_s20 }
 0x254   : > { %v930_v60 = vpop.permute.xlu1 %929 }
 0x255   : > { %v932_v62 = vmul.f32 %v931_v59, %v930_v60  ;;  %v2237_v59 = vld [vmem:[%s2643_s26 + $0x48] sm:$0xff]  ;;  %v2230_v60 = vld [vmem:[%s2643_s26 + $0x10] sm:$0xff] }
 0x257   : > { %v933_v63 = vadd.f32 %v932_v62, %v928_v61  ;;  %v2236_v61 = vld [vmem:[%s2643_s26 + $0x40] sm:$0xff]  ;;  %v2229_v62 = vld [vmem:[%s2643_s26 + $0x8] sm:$0xff] }
 0x259   : > { %v2825_v0 = vmul.f32 0.17677669, %v933_v63  ;;  %v2228_v63 = vld [vmem:[%s2643_s26] sm:$0xff] }
 0x25b   : > { %948 = vrot.lane.b32.xlu2 %v2825_v0, %s2480_s20 }
 0x263   : > { %1053 = vrot.lane.b32.xlu2 %v2814_v57, %s2481_s19 }
 0x26b   : > { %1081 = vrot.lane.b32.xlu2 %v2814_v57, %s2482_s16 }
 0x273   : > { %1079 = vrot.lane.b32.xlu2 %v2825_v0, %s2482_s16 }
 0x2ab   : > { %v952_v1 = vpop.permute.xlu2 %951 }
 0x2ac   : > { %2039 = vmatpush.xpose.msk.msra.mxu3 %vm953_vm12, %v952_v1 }
 0x2b0   : > { %2041 = vmatpush.xpose.msk.msrb.mxu3 %vm953_vm12, %v2814_v57 }
 0x2b5   : > { %v949_v2 = vpop.permute.xlu2 %948 }
 0x2b6   : > { %2040 = vmatmul.msk.f32.vlgmr.msra.gmra.mxu3 %vm953_vm12, %v949_v2 }
 0x2b7   : > { %1046 = vmatpush.msra.mxu3 %v2800_v11 }
 0x2bd   : > { %v1054_v3 = vpop.permute.xlu2 %1053 }
 0x2be   : > { %2042 = vmatmul.msk.f32.vlgmr.msrb.gmra.mxu3 %vm953_vm12, %v2825_v0 }
 0x2bf   : > { %2044 = vmatpush.xpose.msk.msrb.mxu3 %vm953_vm12, %v1054_v3 }
 0x2c5   : > { %v1082_v4 = vpop.permute.xlu2 %1081 }
 0x2c6   : > { %2046 = vmatpush.xpose.msk.msrb.mxu0 %vm953_vm12, %v1082_v4 }
 0x2cd   : > { %v1080_v5 = vpop.permute.xlu2 %1079 }
 0x2ce   : > { %2047 = vmatmul.msk.f32.vlgmr.msrb.gmra.mxu0 %vm953_vm12, %v1080_v5 }
 0x339   : > { %v975_v6 = vpop.f32.mrf.mxu3 }
 0x341   : > { %v999_v10 = vpop.f32.mrf.mxu3 }
 0x342   : > { %v1000_v50 = vadd.f32 %v999_v10, %v975_v6  ;;  %v1512_v6 = vpack.c.bf16 %v2804_v37, %v2804_v37  ;;  %v1511_v10 = vpack.c.bf16 %v2806_v51, %v2806_v51 }
 0x344   : > { %v1002_v12 = vsel %vm946_vm13, %v1000_v50, -1e+30 }
 0x345   : > { %v1004_v13 = vsel %vm1003_vm14, %v1002_v12, -inf }
 0x346   : > { %1005 = vmax.xlane.f32.xlu0 %v1004_v13 }
 0x34b   : > { %v1104_v39 = vpop.f32.mrf.mxu0 }
 0x35a   : > { %1051 = vrot.lane.b32.xlu0 %v2825_v0, %s2481_s19 }
 0x362   : > { %1189 = vrot.lane.b32.xlu0 %v2814_v57, %s2483_s12 }
 0x3b9   : > { %v1006_v14 = vpop.xlane.xlu0 %1005 }
 0x3ba   : > { %v1007_v15 = vsub.f32 %v1002_v12, %v1006_v14 }
 0x3bc   : > { %v1008_v16 = vmul.f32 1.442695, %v1007_v15 }
 0x3be   : > { %2323 = vpow2.f32 %v1008_v16 }
 0x3c4   : > { %v2324_v17 = vpop.eup %2323 }
 0x3c5   : > { %v1010_v18 = vsel %vm1003_vm14, %v2324_v17, 0.0 }
 0x3c6   : > { %1011 = vadd.xlane.f32.xlu1 %v1010_v18 }
 0x3cc   : > { %v1052_v22 = vpop.permute.xlu0 %1051 }
 0x3d4   : > { %v1190_v32 = vpop.permute.xlu0 %1189 }
 0x3df   : > { %1296 = vrot.lane.b32.xlu1 %v2814_v57, %s2484_s13 }
 0x3e7   : > { %1133 = vrot.lane.b32.xlu1 %v2800_v11, %s2483_s12 }
 0x3ef   : > { %1268 = vrot.lane.b32.xlu1 %v2814_v57, %s2485_s22 }
 0x3f7   : > { %1187 = vrot.lane.b32.xlu1 %v2825_v0, %s2483_s12 }
 0x3ff   : > { %1159 = vrot.lane.b32.xlu1 %v2825_v0, %s2486_s28 }
 0x439   : > { %v1012_v19 = vpop.xlane.xlu1 %1011 }
 0x43a   : > { %2325 = vrcp.f32 %v1012_v19  ;;  %v1024_v24 = vand.u32 2147483648, %v1012_v19  ;;  %v1022_v26 = vand.u32 2147483647, %v1012_v19  ;;  %vm1018_vm0 = vweird.f32 %v1012_v19 }
 0x43c   : > { %v1025_v28 = vor.u32 1.1754944e-38, %v1024_v24  ;;  %vm1023_vm2 = vcmp.eq.f32.partialorder %v1022_v26, 8.507059e+37 }
 0x440   : > { %v2326_v20 = vpop.eup %2325 }
 0x441   : > { %v1014_v21 = vmul.f32 %v2326_v20, %v1012_v19  ;;  %vm1019_vm15 = vweird.f32 %v2326_v20 }
 0x442   : > { %vm1020_vm1 = vmor %vm1018_vm0, %vm1019_vm15  ;;  %vm1387_vm0 = vcmask 523264  }
 0x443   : > { %v1015_v23 = vsub.f32 1.0, %v1014_v21 }
 0x445   : > { %v1016_v25 = vmul.f32 %v2326_v20, %v1015_v23 }
 0x447   : > { %v1017_v27 = vadd.f32 %v2326_v20, %v1016_v25 }
 0x449   : > { %v1021_v29 = vsel %vm1020_vm1, %v2326_v20, %v1017_v27  ;;  %vm1389_vm1 = vcmask 785408  }
 0x44a   : > { %v1026_v30 = vsel %vm1023_vm2, %v1025_v28, %v1021_v29 }
 0x44b   : > { %v1027_v31 = vmul.f32 %v2324_v17, %v1026_v30 }
 0x44d   : > { %2043 = vmatmul.msk.f32.vlgmr.msra.gmra.mxu3 %vm1003_vm14, %v1027_v31 }
 0x44e   : > { %2051 = vmatpush.xpose.msk.msra.mxu3 %vm953_vm12, %v1190_v32 }
 0x451   : > { %v1297_v33 = vpop.permute.xlu1 %1296 }
 0x452   : > { %2056 = vmatpush.xpose.msk.msra.mxu2 %vm953_vm12, %v1297_v33 }
 0x455   : > { %2045 = vmatmul.msk.f32.vlgmr.msrb.gmra.mxu3 %vm953_vm12, %v1052_v22 }
 0x456   : > { %1654 = vmatpush.bf16.msrb.mxu2 %v2243_v44 }
 0x459   : > { %v1134_v34 = vpop.permute.xlu1 %1133 }
 0x45a   : > { %1154 = vmatpush.msra.mxu0 %v1134_v34  ;;  %1655 = vmatpush.bf16.msrb.mxu2 %v2242_v46 }
 0x45e   : > { %1656 = vmatpush.bf16.msrb.mxu2 %v2241_v49 }
 0x461   : > { %v1269_v35 = vpop.permute.xlu1 %1268 }
 0x462   : > { %2054 = vmatpush.xpose.msk.msra.mxu1 %vm953_vm12, %v1269_v35  ;;  %1657 = vmatpush.bf16.msrb.mxu2 %v2240_v52 }
 0x466   : > { %1641 = vmatpush.bf16.msrb.mxu1 %v2235_v45  ;;  %1658 = vmatpush.bf16.msrb.mxu2 %v2239_v54 }
 0x469   : > { %v1188_v36 = vpop.permute.xlu1 %1187 }
 0x46a   : > { %2052 = vmatmul.msk.f32.vlgmr.msra.gmra.mxu3 %vm953_vm12, %v1188_v36  ;;  %1642 = vmatpush.bf16.msrb.mxu1 %v2234_v48 }
 0x46b   : > { %1659 = vmatpush.bf16.msrb.mxu2 %v2238_v56 }
 0x46e   : > { %1643 = vmatpush.bf16.msrb.mxu1 %v2233_v53 }
 0x46f   : > { %1660 = vmatpush.bf16.msrb.mxu2 %v2237_v59 }
 0x471   : > { %v1160_v29 = vpop.permute.xlu1 %1159 }
 0x472   : > { %1644 = vmatpush.bf16.msrb.mxu1 %v2232_v55 }
 0x473   : > { %1661 = vmatpush.bf16.msrb.mxu2 %v2236_v61 }
 0x476   : > { %1645 = vmatpush.bf16.msrb.mxu1 %v2231_v58 }
 0x47a   : > { %1646 = vmatpush.bf16.msrb.mxu1 %v2230_v60 }
 0x47e   : > { %1647 = vmatpush.bf16.msrb.mxu1 %v2229_v62 }
 0x482   : > { %1648 = vmatpush.bf16.msrb.mxu1 %v2228_v63 }
 0x4d0   : > { %v2872_v38 = vpop.f32.mrf.mxu3 }
 0x4d8   : > { %v1076_v40 = vpop.f32.mrf.mxu3 }
 0x4d9   : > { %v1105_v41 = vadd.f32 %v1104_v39, %v1076_v40 }
 0x4db   : > { %v1107_v42 = vsel %vm946_vm13, %v1105_v41, -1e+30 }
 0x4dc   : > { %v1108_v43 = vsel %vm1003_vm14, %v1107_v42, -inf }
 0x4dd   : > { %1109 = vmax.xlane.f32.xlu2 %v1108_v43 }
 0x4ed   : > { %v1212_v40 = vpop.f32.mrf.mxu3 }
 0x4f5   : > { %1294 = vrot.lane.b32.xlu2 %v2825_v0, %s2484_s13 }
 0x4fd   : > { %1266 = vrot.lane.b32.xlu2 %v2825_v0, %s2485_s22 }
 0x550   : > { %v1110_v0 = vpop.xlane.xlu2 %1109 }
 0x551   : > { %v1111_v1 = vsub.f32 %v1107_v42, %v1110_v0 }
 0x553   : > { %v1112_v2 = vmul.f32 1.442695, %v1111_v1 }
 0x555   : > { %2327 = vpow2.f32 %v1112_v2 }
 0x558   : > { %v1295_v3 = vpop.permute.xlu2 %1294 }
 0x559   : > { %2057 = vmatmul.msk.f32.vlgmr.msra.gmra.mxu2 %vm953_vm12, %v1295_v3 }
 0x55b   : > { %v2328_v4 = vpop.eup %2327 }
 0x55c   : > { %v1114_v5 = vsel %vm1003_vm14, %v2328_v4, 0.0 }
 0x55d   : > { %1115 = vadd.xlane.f32.xlu0 %v1114_v5 }
 0x560   : > { %v1267_v7 = vpop.permute.xlu2 %1266 }
 0x561   : > { %2055 = vmatmul.msk.f32.vlgmr.msra.gmra.mxu1 %vm953_vm12, %v1267_v7  ;;  %1662 = vmatmul.bf16.vlgmr.msrb.gmra.mxu2 %v1512_v6 }
 0x569   : > { %1649 = vmatmul.bf16.vlgmr.msrb.gmra.mxu1 %v1511_v10 }
 0x571   : > { %1161 = vrot.lane.b32.xlu0 %v2814_v57, %s2486_s28 }
 0x5d0   : > { %v1116_v50 = vpop.xlane.xlu0 %1115 }
 0x5d1   : > { %2329 = vrcp.f32 %v1116_v50  ;;  %v1128_v15 = vand.u32 2147483648, %v1116_v50  ;;  %v1126_v37 = vand.u32 2147483647, %v1116_v50  ;;  %vm1122_vm4 = vweird.f32 %v1116_v50 }
 0x5d3   : > { %v1129_v20 = vor.u32 1.1754944e-38, %v1128_v15  ;;  %vm1127_vm6 = vcmp.eq.f32.partialorder %v1126_v37, 8.507059e+37  ;;  %v2226_v37 = vld [vmem:[%s2661_s30 + $0x30] sm:$0xff] }
 0x5d7   : > { %v2330_v12 = vpop.eup %2329 }
 0x5d8   : > { %v1118_v13 = vmul.f32 %v2330_v12, %v1116_v50  ;;  %vm1123_vm3 = vweird.f32 %v2330_v12 }
 0x5d9   : > { %vm1124_vm5 = vmor %vm1122_vm4, %vm1123_vm3 }
 0x5da   : > { %v1119_v14 = vsub.f32 1.0, %v1118_v13 }
 0x5dc   : > { %v1120_v16 = vmul.f32 %v2330_v12, %v1119_v14  ;;  %v1319_v17 = vpop.f32.mrf.mxu2 }
 0x5de   : > { %v1121_v18 = vadd.f32 %v2330_v12, %v1120_v16  ;;  %v1291_v19 = vpop.f32.mrf.mxu1  ;;  %v2227_v16 = vld [vmem:[%s2661_s30 + $0x38] sm:$0xff] }
 0x5df   : > { %v1320_v51 = vadd.f32 %v1319_v17, %v1291_v19  ;;  %v2225_v17 = vld [vmem:[%s2661_s30 + $0x28] sm:$0xff]  ;;  %v2223_v19 = vld [vmem:[%s2661_s30 + $0x18] sm:$0xff] }
 0x5e0   : > { %v1125_v21 = vsel %vm1124_vm5, %v2330_v12, %v1121_v18  ;;  %v2224_v18 = vld [vmem:[%s2661_s30 + $0x20] sm:$0xff] }
 0x5e1   : > { %v1130_v22 = vsel %vm1127_vm6, %v1129_v20, %v1125_v21  ;;  %v1322_v57 = vsel %vm946_vm13, %v1320_v51, -1e+30  ;;  %v2222_v20 = vld [vmem:[%s2661_s30 + $0x10] sm:$0xff]  ;;  %v2221_v51 = vld [vmem:[%s2661_s30 + $0x8] sm:$0xff] }
 0x5e2   : > { %v1323_v23 = vsel %vm1003_vm14, %v1322_v57, -inf  ;;  %v1131_v24 = vmul.f32 %v2328_v4, %v1130_v22  ;;  %v2220_v22 = vld [vmem:[%s2661_s30] sm:$0xff] }
 0x5e3   : > { %1324 = vmax.xlane.f32.xlu2 %v1323_v23  ;;  %v1162_v25 = vpop.permute.xlu0 %1161 }
 0x5e4   : > { %2048 = vmatmul.msk.f32.vlgmr.msra.gmra.mxu0 %vm1003_vm14, %v1131_v24  ;;  %v1663_v26 = vpop.f32.mrf.mxu2 }
 0x5e5   : > { %2049 = vmatpush.xpose.msk.msrb.mxu0 %vm953_vm12, %v1162_v25 }
 0x5e6   : > { %v1650_v27 = vpop.f32.mrf.mxu1 }
 0x5e7   : > { %v2913_v28 = vadd.f32 %v1663_v26, %v1650_v27 }
 0x5ec   : > { %2050 = vmatmul.msk.f32.vlgmr.msrb.gmra.mxu0 %vm953_vm12, %v1160_v29  ;;  %v1665_v30 = vpop.f32.mrf.mxu2 }
 0x5ee   : > { %v1652_v31 = vpop.f32.mrf.mxu1 }
 0x5ef   : > { %v2339_v31 = vld [vmem:[#allocation2] sm:$0xff] }
 0x656   : > { %v1325_v32 = vpop.xlane.xlu2 %1324 }
 0x657   : > { %v1326_v33 = vsub.f32 %v1322_v57, %v1325_v32 }
 0x659   : > { %v1327_v34 = vmul.f32 1.442695, %v1326_v33 }
 0x65b   : > { %2331 = vpow2.f32 %v1327_v34 }
 0x661   : > { %v2332_v35 = vpop.eup %2331  ;;  %v1156_v36 = vpop.f32.mrf.mxu0 }
 0x662   : > { %v1329_v39 = vsel %vm1003_vm14, %v2332_v35, 0.0 }
 0x663   : > { %1330 = vadd.xlane.f32.xlu1 %v1329_v39 }
 0x669   : > { %v1184_v41 = vpop.f32.mrf.mxu0 }
 0x66a   : > { %v1213_v42 = vadd.f32 %v1212_v40, %v1184_v41 }
 0x66c   : > { %v1215_v43 = vsel %vm946_vm13, %v1213_v42, -1e+30 }
 0x66d   : > { %v1216_v44 = vsel %vm1003_vm14, %v1215_v43, -inf }
 0x66e   : > { %1217 = vmax.xlane.f32.xlu0 %v1216_v44 }
 0x67c   : > { %1240 = vrot.lane.b32.xlu1 %v2800_v11, %s2480_s20 }
 0x682   : > { %1347 = vrot.lane.b32.xlu0 %v2800_v11, %s2486_s28 }
 0x6d6   : > { %v1331_v45 = vpop.xlane.xlu1 %1330 }
 0x6d7   : > { %2333 = vrcp.f32 %v1331_v45  ;;  %v1343_v9 = vand.u32 2147483648, %v1331_v45  ;;  %vm1337_vm8 = vweird.f32 %v1331_v45  ;;  %v1341_v58 = vand.u32 2147483647, %v1331_v45 }
 0x6d9   : > { %v1344_v61 = vor.u32 1.1754944e-38, %v1343_v9  ;;  %vm1342_vm10 = vcmp.eq.f32.partialorder %v1341_v58, 8.507059e+37 }
 0x6dd   : > { %v2334_v46 = vpop.eup %2333 }
 0x6de   : > { %v1333_v48 = vmul.f32 %v2334_v46, %v1331_v45  ;;  %vm1338_vm7 = vweird.f32 %v2334_v46 }
 0x6df   : > { %vm1339_vm9 = vmor %vm1337_vm8, %vm1338_vm7 }
 0x6e0   : > { %v1334_v52 = vsub.f32 1.0, %v1333_v48 }
 0x6e1   : > { %v1218_v49 = vpop.xlane.xlu0 %1217 }
 0x6e2   : > { %v1219_v53 = vsub.f32 %v1215_v43, %v1218_v49  ;;  %v1335_v55 = vmul.f32 %v2334_v46, %v1334_v52 }
 0x6e4   : > { %v1220_v54 = vmul.f32 1.442695, %v1219_v53  ;;  %v1336_v8 = vadd.f32 %v2334_v46, %v1335_v55 }
 0x6e6   : > { %2335 = vpow2.f32 %v1220_v54  ;;  %v1340_v11 = vsel %vm1339_vm9, %v2334_v46, %v1336_v8 }
 0x6e7   : > { %v1345_v62 = vsel %vm1342_vm10, %v1344_v61, %v1340_v11 }
 0x6e8   : > { %v1346_v0 = vmul.f32 %v2332_v35, %v1345_v62 }
 0x6ec   : > { %v2336_v56 = vpop.eup %2335 }
 0x6ed   : > { %v1222_v59 = vsel %vm1003_vm14, %v2336_v56, 0.0 }
 0x6ee   : > { %v1241_v60 = vpop.permute.xlu1 %1240  ;;  %1223 = vadd.xlane.f32.xlu2 %v1222_v59 }
 0x6ef   : > { %1261 = vmatpush.msra.mxu0 %v1241_v60 }
 0x6f1   : > { %1456 = vmatpush.bf16.msrb.mxu0 %v2227_v16 }
 0x6f4   : > { %v1348_v63 = vpop.permute.xlu0 %1347 }
 0x6f5   : > { %1368 = vmatpush.msrb.mxu3 %v1348_v63  ;;  %1457 = vmatpush.bf16.msrb.mxu0 %v2226_v37 }
 0x6f6   : > { %2058 = vmatmul.msk.f32.vlgmr.msrb.gmra.mxu3 %vm1003_vm14, %v1346_v0 }
 0x6f9   : > { %1458 = vmatpush.bf16.msrb.mxu0 %v2225_v17 }
 0x6fd   : > { %1459 = vmatpush.bf16.msrb.mxu0 %v2224_v18 }
 0x701   : > { %1460 = vmatpush.bf16.msrb.mxu0 %v2223_v19 }
 0x705   : > { %1461 = vmatpush.bf16.msrb.mxu0 %v2222_v20 }
 0x706   : > { %1374 = vrot.lane.b32.xlu2 %v1156_v36, %s2486_s28 }
 0x709   : > { %1462 = vmatpush.bf16.msrb.mxu0 %v2221_v51 }
 0x70d   : > { %1463 = vmatpush.bf16.msrb.mxu0 %v2220_v22 }
 0x761   : > { %v1224_v1 = vpop.xlane.xlu2 %1223 }
 0x762   : > { %2337 = vrcp.f32 %v1224_v1  ;;  %v1236_v5 = vand.u32 2147483648, %v1224_v1  ;;  %v1234_v7 = vand.u32 2147483647, %v1224_v1  ;;  %vm1230_vm12 = vweird.f32 %v1224_v1 }
 0x764   : > { %v1237_v50 = vor.u32 1.1754944e-38, %v1236_v5  ;;  %vm1235_vm15 = vcmp.eq.f32.partialorder %v1234_v7, 8.507059e+37 }
 0x768   : > { %v2338_v2 = vpop.eup %2337 }
 0x769   : > { %v1226_v3 = vmul.f32 %v2338_v2, %v1224_v1  ;;  %vm1231_vm11 = vweird.f32 %v2338_v2  ;;  %v1375_v57 = vpop.permute.xlu2 %1374 }
 0x76a   : > { %vm1232_vm13 = vmor %vm1230_vm12, %vm1231_vm11 }
 0x76b   : > { %v1227_v4 = vsub.f32 1.0, %v1226_v3 }
 0x76d   : > { %v1228_v6 = vmul.f32 %v2338_v2, %v1227_v4 }
 0x76f   : > { %v1229_v10 = vadd.f32 %v2338_v2, %v1228_v6 }
 0x771   : > { %v1233_v12 = vsel %vm1232_vm13, %v2338_v2, %v1229_v10 }
 0x772   : > { %v1238_v13 = vsel %vm1235_vm15, %v1237_v50, %v1233_v12 }
 0x773   : > { %v1239_v14 = vmul.f32 %v2336_v56, %v1238_v13 }
 0x775   : > { %2053 = vmatmul.msk.f32.vlgmr.msra.gmra.mxu0 %vm1003_vm14, %v1239_v14  ;;  %vm1385_vm14 = vcmask 261120  }
 0x776   : > { %v1386_v23 = vsel %vm1385_vm14, %v2872_v38, %v1375_v57 }
 0x779   : > { %v1370_v15 = vpop.f32.mrf.mxu3 }
 0x77a   : > { %1382 = vrot.lane.b32.xlu1 %v1370_v15, %s2483_s12 }
 0x7ec   : > { %v1383_v25 = vpop.permute.xlu1 %1382 }
 0x7f2   : > { %v1263_v21 = vpop.f32.mrf.mxu0 }
 0x7f3   : > { %1378 = vrot.lane.b32.xlu0 %v1263_v21, %s2480_s20 }
 0x865   : > { %v1379_v24 = vpop.permute.xlu0 %1378 }
 0x866   : > { %v1388_v26 = vsel %vm1387_vm0, %v1386_v23, %v1379_v24 }
 0x867   : > { %v1390_v27 = vsel %vm1389_vm1, %v1388_v26, %v1383_v25 }
 0x868   : > { %v1391_v29 = vpack.c.bf16 %v1390_v27, %v1390_v27 }
 0x86a   : > { %1464 = vmatmul.bf16.vlgmr.msrb.gmra.mxu0 %v1391_v29 }
 0x8e7   : > { %v1465_v30 = vpop.f32.mrf.mxu0 }
 0x8e8   : > { %v1667_v32 = vadd.f32 %v2339_v31, %v1465_v30 }
 0x8ea   : > { %v1668_v33 = vadd.f32 %v1667_v32, %v2913_v28 }
 0x8eb   : > { %1673 = sbr.rel (%p2157_p7) target bundleno = 2553 (0x9f9), region = 76 }
 0x8ec   : > { %1669 = vst [vmem:[#allocation2] sm:$0xff] %v1668_v33 }
 0x8ef   : > { %v1467_v34 = vpop.f32.mrf.mxu0 }
 0x8f0   : > { %1674 = vadd.xlane.f32.xlu0 %v1668_v33  ;;  %v2340_v49 = vld [vmem:[%s2973_s9] ss:$0 sm:$0xff] }
 0x963   : > { %v1675_v35 = vpop.xlane.xlu0 %1674 }
 0x964   : > { %v1676_v38 = vmul.f32 %v1675_v35, %v2696_v47 }
 0x966   : > { %v1677_v36 = vsub.f32 %v1668_v33, %v1676_v38 }
 0x968   : > { %v1678_v39 = vmul.f32 %v1677_v36, %v1677_v36 }
 0x96a   : > { %1679 = vadd.xlane.f32.xlu0 %v1678_v39 }
 0x9dd   : > { %v1680_v40 = vpop.xlane.xlu0 %1679 }
 0x9de   : > { %v1681_v41 = vmul.f32 %v1680_v40, %v2696_v47 }
 0x9e0   : > { %v1682_v42 = vadd.f32 1e-05, %v1681_v41 }
 0x9e2   : > { %2341 = vrsqrt.f32 %v1682_v42  ;;  %vm1689_vm3 = vweird.f32 %v1682_v42 }
 0x9e8   : > { %v2342_v43 = vpop.eup %2341 }
 0x9e9   : > { %v1684_v44 = vmul.f32 %v2342_v43, %v1682_v42  ;;  %vm1690_vm2 = vweird.f32 %v2342_v43 }
 0x9ea   : > { %vm1691_vm4 = vmor %vm1689_vm3, %vm1690_vm2 }
 0x9eb   : > { %v1685_v28 = vmul.f32 %v2342_v43, %v1684_v44 }
 0x9ed   : > { %v1686_v45 = vmul.f32 0.5, %v1685_v28 }
 0x9ef   : > { %v1687_v46 = vsub.f32 1.5, %v1686_v45 }
 0x9f1   : > { %v1688_v48 = vmul.f32 %v2342_v43, %v1687_v46 }
 0x9f3   : > { %v1692_v52 = vsel %vm1691_vm4, %v2342_v43, %v1688_v48 }
 0x9f4   : > { %v1693_v53 = vmul.f32 %v1692_v52, %v1677_v36 }
 0x9f6   : > { %v1698_v54 = vmul.f32 %v2340_v49, %v1693_v53 }
 0x9f8   : > { %1699 = vst [vmem:[#allocation8] sm:$0xff] %v1698_v54 }
 0x9f9 PF: > { %p2263_p2 = scmp.eq.s32.totalorder %s2562_s17, 1  ;;  %s2487_s23 = smov [#allocation8]  }
 0x9fa   : > { %s1706_s27 = sshll.u32 %s2487_s23, 4  ;;  %s1708_s25 = sshll.u32 %s2974_s10, 4  ;;  %s1707_s27 = int_to_ptr.vmem [resolvable:$true] %s1706_s27  ;;  %s1709_s25 = int_to_ptr.hbm [resolvable:$true] %s1708_s25 }
 0x9fb   : > { %2252 = dma.vmem_to_hbm [thread:$0]  (%p2263_p2), %s1707_s27, 128, %s1709_s25, [#allocation5]  }
 0x9fc   : > { %2456 = dma.done.wait (%p2263_p2), [#allocation5], 128  }
 0x9fd   : > { %2458 = vsyncadd (%p2263_p2), [#allocation5], 4294967168 }
 0x9fe PF: > { %s2986_s16 = sld [smem:[#allocation13_spill]]  ;;  %s2989_s13 = smov %s2465_s14 }
 0x9ff   : > { %s2987_s29 = sld [smem:[#allocation12_spill]] }
 0xa00   : > { %s2988_s15 = sld [smem:[#allocation14_spill]] }
 0xa04   : > { %p24_p3 = scmp.ge.s32.totalorder %s2986_s16, 4  }
 0xa05   : > { %s2990_s14 = smov %s2987_s29 }
 0xa06   :  { %26 = sbr.rel (!%p24_p3) target bundleno = 8 (0x8), region = 124 }
 0xa0b   :  { %1722 = vsyncpa [#allocation4], 1 }
 0xa0c   :  { %1724 = vsyncpa [#allocation4 + $0x1], 1 }
 0xa0d   :  { %1725 = vsyncpa [#allocation7], 1 }
 0xa0e   :  { %1727 = vsyncpa [#allocation7 + $0x1], 1 }
 0xa0f   :  { %1728 = vsyncpa [#allocation5], 1 }
 0xa10   :  { %1730 = vsyncpa [#allocation5 + $0x1], 1 }

</bundles_post_ra>
